<compile_context>
chip_gen: v6e
topology: v6e:2x2x1
jax: 0.10.0
libtpu: 0.0.40
codegen_flags: <defaults>
</compile_context>

<pallas_src>
import functools

import jax
import jax.numpy as jnp
from jax import lax
from jax.experimental import pallas as pl
from jax.experimental.pallas import tpu as pltpu


def _attention_layer_kernel(xq_ref, xk_ref, xv_ref,
                            wq_ref, bq_ref, wk_ref, bk_ref, wv_ref, bv_ref,
                            wo_ref, bo_ref, gamma_ref, beta_ref,
                            out_ref, *, batch_tile, num_heads, dk, eps, causal):
    Bt = batch_tile
    H = num_heads
    S = xq_ref.shape[1]
    D = xq_ref.shape[2]

    # Flatten the batch tile: projections / residual / LayerNorm operate on
    # (Bt*S, D) so the MXU M dim is Bt*S rows instead of S.
    xq = xq_ref[...].reshape(Bt * S, D)
    xk = xk_ref[...].reshape(Bt * S, D)
    xv = xv_ref[...].reshape(Bt * S, D)

    xq_b = xq.astype(jnp.bfloat16)
    xk_b = xk.astype(jnp.bfloat16)
    xv_b = xv.astype(jnp.bfloat16)

    # --- Q/K/V projections (MXU, bf16 operands, f32 accumulation). -----------
    # XQ/XK/XV are distinct inputs, so the three projections cannot be fused
    # into one (D, 3*HD) matmul without changing semantics; each projection
    # already covers all heads and all Bt batch elements in one matmul.
    inv_sqrt_dk = 1.0 / (dk ** 0.5)
    # Fold the 1/sqrt(dk) score scaling into the small (Bt*S, HD) Q projection.
    qp = (jnp.dot(xq_b, wq_ref[...], preferred_element_type=jnp.float32)
          + bq_ref[...]) * inv_sqrt_dk
    kp = jnp.dot(xk_b, wk_ref[...], preferred_element_type=jnp.float32) + bk_ref[...]
    vp = jnp.dot(xv_b, wv_ref[...], preferred_element_type=jnp.float32) + bv_ref[...]

    qp_b = qp.astype(jnp.bfloat16)
    kp_b = kp.astype(jnp.bfloat16)
    vp_b = vp.astype(jnp.bfloat16)

    if causal:
        # Built once per kernel invocation (hoisted out of the per-b loop);
        # saves an (S, S) HBM->VMEM DMA + buffer vs. shipping the mask buffer.
        row = lax.broadcasted_iota(jnp.int32, (S, S), 0)
        col = lax.broadcasted_iota(jnp.int32, (S, S), 1)
        neg_mask = (col > row)[None, :, :]
    # else: the module's mask buffer is all zeros -> skip the add entirely.

    # --- Attention core, one (independent) unrolled iteration per batch elem. -
    attn_parts = []
    for b in range(Bt):  # static unroll; Bt is small by construction
        r0 = b * S
        q3 = qp_b[r0:r0 + S, :].reshape(S, H, dk)   # (S, H, dk)
        k3 = kp_b[r0:r0 + S, :].reshape(S, H, dk)
        v3 = vp_b[r0:r0 + S, :].reshape(S, H, dk)

        # Heads as a dot_general batch dim (no per-head lane slicing).
        # NOTE: dk=32 contraction depth caps MXU K-utilization (25% v5e,
        # 12.5% v6e/v7x) -- model-structural; M/N are filled via batching.
        scores = jnp.einsum("qhd,khd->hqk", q3, k3,
                            preferred_element_type=jnp.float32)       # (H, S, S)
        if causal:
            scores = jnp.where(neg_mask, -jnp.inf, scores)

        # Softmax along keys (f32 on the VPU; denominator reciprocal on the EUP).
        scores = scores - jnp.max(scores, axis=-1, keepdims=True)
        p = jnp.exp(scores)
        p = p * pl.reciprocal(jnp.sum(p, axis=-1, keepdims=True), approx=True)

        # Per-head context: (H, S, dk).
        ctx = jnp.einsum("hqk,khd->hqd", p.astype(jnp.bfloat16), v3,
                         preferred_element_type=jnp.float32)

        # Output projection accumulated over heads (no lane-axis concat).
        parts = jnp.einsum("hqd,hde->hqe", ctx.astype(jnp.bfloat16), wo_ref[...],
                           preferred_element_type=jnp.float32)        # (H, S, D)
        attn_parts.append(parts.sum(axis=0))                          # (S, D)

    attn_out = attn_parts[0] if Bt == 1 else jnp.concatenate(attn_parts, axis=0)
    attn_out = attn_out + bo_ref[...]                                 # (Bt*S, D)

    # TODO(synk): dropout_1 implemented as identity (eval-mode semantics).
    res = xq + attn_out

    # --- LayerNorm over the model dim (f32, PyTorch default eps=1e-5). -------
    mean = jnp.mean(res, axis=-1, keepdims=True)
    var = jnp.mean((res - mean) ** 2, axis=-1, keepdims=True)
    normed = (res - mean) * lax.rsqrt(var + eps)
    out = normed * gamma_ref[...] + beta_ref[...]
    out_ref[...] = out.reshape(Bt, S, D)


def attention_layer_pallas(xq, xk, xv, params, *, num_heads, dk, causal=False,
                           eps=1e-5, batch_tile=None):
    B, S, D = xq.shape
    HD = num_heads * dk
    assert params["wq"].shape == (D, HD), "weight shape inconsistent with heads*dk"

    if batch_tile is None:
        # Batch enough elements per grid step that the flattened (Bt*S, D)
        # projection M-dim reaches ~128 rows, but never more than B.
        batch_tile = max(1, min(B, -(-128 // S)))
    while B % batch_tile:
        batch_tile -= 1

    # Ship MXU weights as bf16 (halves weight DMA); biases / LN params stay f32.
    wq = params["wq"].astype(jnp.bfloat16)
    wk = params["wk"].astype(jnp.bfloat16)
    wv = params["wv"].astype(jnp.bfloat16)
    # Output projection reshaped once outside the kernel to (H, dk, D).
    wo = params["wo"].reshape(num_heads, dk, D).astype(jnp.bfloat16)

    kernel = functools.partial(_attention_layer_kernel, batch_tile=batch_tile,
                               num_heads=num_heads, dk=dk, eps=eps, causal=causal)

    # Derive the VMEM limit from the actual chip: ~48 MiB on v7x (64 MiB
    # physical), up to ~96-100 MiB on v5e/v6e (128 MiB physical).
    try:
        vmem_cap = pltpu.get_tpu_info().vmem_capacity_bytes
    except Exception:
        vmem_cap = 64 * 1024 * 1024
    vmem_limit = min(int(vmem_cap * 3 // 4), 100 * 1024 * 1024)

    seq_spec = pl.BlockSpec((batch_tile, S, D), lambda b: (b, 0, 0))
    const2d = lambda shape: pl.BlockSpec(shape, lambda b: (0, 0))
    const3d = lambda shape: pl.BlockSpec(shape, lambda b: (0, 0, 0))
    # TODO(synk): at D >= 1024, stage the 10 constant weight/bias operands once
    # (single-buffered) instead of default double-buffering to save VMEM on v7x.
    # TODO(synk): for large S, replace the monolithic (H, S, S) scores with a
    # KV-tiled online-softmax (flash) grid axis (tq/tk multiples of 256 on
    # v6e/v7x, 128 on v5e) so VMEM stays flat and fully-masked KV tiles are skipped.

    return pl.pallas_call(
        kernel,
        out_shape=jax.ShapeDtypeStruct((B, S, D), jnp.float32),
        grid_spec=pltpu.PrefetchScalarGridSpec(
            num_scalar_prefetch=0,
            grid=(B // batch_tile,),
            in_specs=[
                seq_spec, seq_spec, seq_spec,                    # XQ, XK, XV
                const2d((D, HD)), const2d((1, HD)),              # WQ (bf16), bQ
                const2d((D, HD)), const2d((1, HD)),              # WK (bf16), bK
                const2d((D, HD)), const2d((1, HD)),              # WV (bf16), bV
                const3d((num_heads, dk, D)), const2d((1, D)),    # W_out (H,dk,D), b_out
                const2d((1, D)), const2d((1, D)),                # layernorm gamma, beta
            ],
            out_specs=seq_spec,
        ),
        compiler_params=pltpu.CompilerParams(
            dimension_semantics=("parallel",),
            vmem_limit_bytes=vmem_limit,
        ),
    )(xq, xk, xv,
      wq, params["bq"], wk, params["bk"], wv, params["bv"],
      wo, params["bo"], params["gamma"], params["beta"])


def attention_layer_ref(xq, xk, xv, params, *, num_heads, dk, causal=False,
                        eps=1e-5):
    """Pure-JAX f32 reference mirroring the PyTorch module (eval mode)."""
    S = xq.shape[1]
    if causal:
        tri = jnp.triu(jnp.ones((S, S), jnp.float32), k=1)
        mask = jnp.where(tri == 1, -jnp.inf, 0.0).astype(jnp.float32)
    else:
        mask = jnp.zeros((S, S), jnp.float32)
    qp = xq @ params["wq"] + params["bq"][0]
    kp = xk @ params["wk"] + params["bk"][0]
    vp = xv @ params["wv"] + params["bv"][0]
    ctxs = []
    for h in range(num_heads):
        qh = qp[..., h * dk:(h + 1) * dk]
        kh = kp[..., h * dk:(h + 1) * dk]
        vh = vp[..., h * dk:(h + 1) * dk]
        scores = jnp.einsum("bqd,bkd->bqk", qh, kh) / (dk ** 0.5) + mask
        p = jax.nn.softmax(scores, axis=-1)
        ctxs.append(jnp.einsum("bqk,bkd->bqd", p, vh))
    ctx = jnp.concatenate(ctxs, axis=-1)
    attn_out = ctx @ params["wo"] + params["bo"][0]
    res = xq + attn_out
    mean = jnp.mean(res, axis=-1, keepdims=True)
    var = jnp.mean((res - mean) ** 2, axis=-1, keepdims=True)
    return (res - mean) / jnp.sqrt(var + eps) * params["gamma"][0] + params["beta"][0]


def make_params(key, dmodel, num_heads):
    dk = dmodel // num_heads
    HD = num_heads * dk
    ks = jax.random.split(key, 8)
    scale = 1.0 / (dmodel ** 0.5)
    return {
        "wq": jax.random.uniform(ks[0], (dmodel, HD), jnp.float32, -scale, scale),
        "bq": jax.random.uniform(ks[1], (1, HD), jnp.float32, -scale, scale),
        "wk": jax.random.uniform(ks[2], (dmodel, HD), jnp.float32, -scale, scale),
        "bk": jax.random.uniform(ks[3], (1, HD), jnp.float32, -scale, scale),
        "wv": jax.random.uniform(ks[4], (dmodel, HD), jnp.float32, -scale, scale),
        "bv": jax.random.uniform(ks[5], (1, HD), jnp.float32, -scale, scale),
        "wo": jax.random.uniform(ks[6], (HD, dmodel), jnp.float32, -scale, scale),
        "bo": jax.random.uniform(ks[7], (1, dmodel), jnp.float32, -scale, scale),
        "gamma": jnp.ones((1, dmodel), jnp.float32),
        "beta": jnp.zeros((1, dmodel), jnp.float32),
    }


if __name__ == "__main__":
    # batch=2, seq (= block_size)=8, dmodel=128 (lane-dense last dim), 4 heads -> dk=32
    B, S, D, H = 2, 8, 128, 4
    dk = D // H

    key = jax.random.PRNGKey(0)
    kq, kk, kv, kp = jax.random.split(key, 4)
    xq = jax.random.normal(kq, (B, S, D), jnp.float32)
    xk = jax.random.normal(kk, (B, S, D), jnp.float32)
    xv = jax.random.normal(kv, (B, S, D), jnp.float32)

    params = make_params(kp, dmodel=D, num_heads=H)

    for causal in (False, True):   # both mask=False and mask=True module variants
        out = attention_layer_pallas(xq, xk, xv, params, num_heads=H, dk=dk,
                                     causal=causal)
        out = jax.block_until_ready(out)
        ref = attention_layer_ref(xq, xk, xv, params, num_heads=H, dk=dk,
                                  causal=causal)
        assert out.shape == (B, S, D)
        # Kernel uses bf16 MXU operands + approx reciprocal vs. the f32 reference.
        assert jnp.allclose(out, ref, atol=5e-2, rtol=5e-2), "mismatch vs reference"

    print("KERNEL_OK")
</pallas_src>

<mosaic_0001>
module attributes {stable_mosaic.version = 11 : i64} {
  func.func @_attention_layer_kernel(%arg0: i32, %arg1: memref<2x8x128xf32, #tpu.memory_space<vmem>>, %arg2: memref<2x8x128xf32, #tpu.memory_space<vmem>>, %arg3: memref<2x8x128xf32, #tpu.memory_space<vmem>>, %arg4: memref<128x128xbf16, #tpu.memory_space<vmem>>, %arg5: memref<1x128xf32, #tpu.memory_space<vmem>>, %arg6: memref<128x128xbf16, #tpu.memory_space<vmem>>, %arg7: memref<1x128xf32, #tpu.memory_space<vmem>>, %arg8: memref<128x128xbf16, #tpu.memory_space<vmem>>, %arg9: memref<1x128xf32, #tpu.memory_space<vmem>>, %arg10: memref<4x32x128xbf16, #tpu.memory_space<vmem>>, %arg11: memref<1x128xf32, #tpu.memory_space<vmem>>, %arg12: memref<1x128xf32, #tpu.memory_space<vmem>>, %arg13: memref<1x128xf32, #tpu.memory_space<vmem>>, %arg14: memref<2x8x128xf32, #tpu.memory_space<vmem>>) attributes {dimension_semantics = [#tpu.dimension_semantics<parallel>], iteration_bounds = array<i64: 1>, scalar_prefetch = 0 : i64, scratch_operands = 0 : i64, tpu.core_type = #tpu.core_type<tc>, window_params = [{transform_indices = @transform_0, window_bounds = array<i64: 2, 8, 128>}, {transform_indices = @transform_1, window_bounds = array<i64: 2, 8, 128>}, {transform_indices = @transform_2, window_bounds = array<i64: 2, 8, 128>}, {pipeline_mode = #tpu.pipeline_mode<synchronous>, transform_indices = @transform_3, window_bounds = array<i64: 128, 128>}, {pipeline_mode = #tpu.pipeline_mode<synchronous>, transform_indices = @transform_4, window_bounds = array<i64: 1, 128>}, {pipeline_mode = #tpu.pipeline_mode<synchronous>, transform_indices = @transform_5, window_bounds = array<i64: 128, 128>}, {pipeline_mode = #tpu.pipeline_mode<synchronous>, transform_indices = @transform_6, window_bounds = array<i64: 1, 128>}, {pipeline_mode = #tpu.pipeline_mode<synchronous>, transform_indices = @transform_7, window_bounds = array<i64: 128, 128>}, {pipeline_mode = #tpu.pipeline_mode<synchronous>, transform_indices = @transform_8, window_bounds = array<i64: 1, 128>}, {pipeline_mode = #tpu.pipeline_mode<synchronous>, transform_indices = @transform_9, window_bounds = array<i64: 4, 32, 128>}, {pipeline_mode = #tpu.pipeline_mode<synchronous>, transform_indices = @transform_10, window_bounds = array<i64: 1, 128>}, {pipeline_mode = #tpu.pipeline_mode<synchronous>, transform_indices = @transform_11, window_bounds = array<i64: 1, 128>}, {pipeline_mode = #tpu.pipeline_mode<synchronous>, transform_indices = @transform_12, window_bounds = array<i64: 1, 128>}, {transform_indices = @transform_13, window_bounds = array<i64: 2, 8, 128>}]} {
    %c0 = arith.constant 0 : index
    %c0_0 = arith.constant 0 : index
    %c0_1 = arith.constant 0 : index
    %0 = vector.load %arg1[%c0, %c0_0, %c0_1] : memref<2x8x128xf32, #tpu.memory_space<vmem>>, vector<2x8x128xf32>
    %1 = vector.shape_cast %0 : vector<2x8x128xf32> to vector<16x128xf32>
    %c0_2 = arith.constant 0 : index
    %c0_3 = arith.constant 0 : index
    %c0_4 = arith.constant 0 : index
    %2 = vector.load %arg2[%c0_2, %c0_3, %c0_4] : memref<2x8x128xf32, #tpu.memory_space<vmem>>, vector<2x8x128xf32>
    %3 = vector.shape_cast %2 : vector<2x8x128xf32> to vector<16x128xf32>
    %c0_5 = arith.constant 0 : index
    %c0_6 = arith.constant 0 : index
    %c0_7 = arith.constant 0 : index
    %4 = vector.load %arg3[%c0_5, %c0_6, %c0_7] : memref<2x8x128xf32, #tpu.memory_space<vmem>>, vector<2x8x128xf32>
    %5 = vector.shape_cast %4 : vector<2x8x128xf32> to vector<16x128xf32>
    %6 = arith.truncf %1 : vector<16x128xf32> to vector<16x128xbf16>
    %7 = arith.truncf %3 : vector<16x128xf32> to vector<16x128xbf16>
    %8 = arith.truncf %5 : vector<16x128xf32> to vector<16x128xbf16>
    %c0_8 = arith.constant 0 : index
    %c0_9 = arith.constant 0 : index
    %9 = vector.load %arg4[%c0_8, %c0_9] : memref<128x128xbf16, #tpu.memory_space<vmem>>, vector<128x128xbf16>
    %cst = arith.constant dense<0.000000e+00> : vector<16x128xf32>
    %10 = tpu.matmul %6, %9, %cst {dimension_numbers = #tpu.dot_dimension_numbers<[1], [0], [0], [1], [0, 0, 1, 1], [], []>} : vector<16x128xbf16>, vector<128x128xbf16>, vector<16x128xf32> -> vector<16x128xf32>
    %c0_10 = arith.constant 0 : index
    %c0_11 = arith.constant 0 : index
    %11 = vector.load %arg5[%c0_10, %c0_11] : memref<1x128xf32, #tpu.memory_space<vmem>>, vector<1x128xf32>
    %12 = vector.broadcast %11 : vector<1x128xf32> to vector<16x128xf32>
    %13 = arith.addf %10, %12 : vector<16x128xf32>
    %cst_12 = arith.constant 0.176776692 : f32
    %14 = vector.broadcast %cst_12 : f32 to vector<16x128xf32>
    %15 = arith.mulf %13, %14 : vector<16x128xf32>
    %c0_13 = arith.constant 0 : index
    %c0_14 = arith.constant 0 : index
    %16 = vector.load %arg6[%c0_13, %c0_14] : memref<128x128xbf16, #tpu.memory_space<vmem>>, vector<128x128xbf16>
    %cst_15 = arith.constant dense<0.000000e+00> : vector<16x128xf32>
    %17 = tpu.matmul %7, %16, %cst_15 {dimension_numbers = #tpu.dot_dimension_numbers<[1], [0], [0], [1], [0, 0, 1, 1], [], []>} : vector<16x128xbf16>, vector<128x128xbf16>, vector<16x128xf32> -> vector<16x128xf32>
    %c0_16 = arith.constant 0 : index
    %c0_17 = arith.constant 0 : index
    %18 = vector.load %arg7[%c0_16, %c0_17] : memref<1x128xf32, #tpu.memory_space<vmem>>, vector<1x128xf32>
    %19 = vector.broadcast %18 : vector<1x128xf32> to vector<16x128xf32>
    %20 = arith.addf %17, %19 : vector<16x128xf32>
    %c0_18 = arith.constant 0 : index
    %c0_19 = arith.constant 0 : index
    %21 = vector.load %arg8[%c0_18, %c0_19] : memref<128x128xbf16, #tpu.memory_space<vmem>>, vector<128x128xbf16>
    %cst_20 = arith.constant dense<0.000000e+00> : vector<16x128xf32>
    %22 = tpu.matmul %8, %21, %cst_20 {dimension_numbers = #tpu.dot_dimension_numbers<[1], [0], [0], [1], [0, 0, 1, 1], [], []>} : vector<16x128xbf16>, vector<128x128xbf16>, vector<16x128xf32> -> vector<16x128xf32>
    %c0_21 = arith.constant 0 : index
    %c0_22 = arith.constant 0 : index
    %23 = vector.load %arg9[%c0_21, %c0_22] : memref<1x128xf32, #tpu.memory_space<vmem>>, vector<1x128xf32>
    %24 = vector.broadcast %23 : vector<1x128xf32> to vector<16x128xf32>
    %25 = arith.addf %22, %24 : vector<16x128xf32>
    %26 = arith.truncf %15 : vector<16x128xf32> to vector<16x128xbf16>
    %27 = arith.truncf %20 : vector<16x128xf32> to vector<16x128xbf16>
    %28 = arith.truncf %25 : vector<16x128xf32> to vector<16x128xbf16>
    %29 = vector.extract_strided_slice %26 {offsets = [0, 0], sizes = [8, 128], strides = [1, 1]} : vector<16x128xbf16> to vector<8x128xbf16>
    %30 = vector.shape_cast %29 : vector<8x128xbf16> to vector<8x4x32xbf16>
    %31 = vector.extract_strided_slice %27 {offsets = [0, 0], sizes = [8, 128], strides = [1, 1]} : vector<16x128xbf16> to vector<8x128xbf16>
    %32 = vector.shape_cast %31 : vector<8x128xbf16> to vector<8x4x32xbf16>
    %33 = vector.extract_strided_slice %28 {offsets = [0, 0], sizes = [8, 128], strides = [1, 1]} : vector<16x128xbf16> to vector<8x128xbf16>
    %34 = vector.shape_cast %33 : vector<8x128xbf16> to vector<8x4x32xbf16>
    "tpu.trace_start"() <{level = 10 : i32, message = "qhd,khd->hqk"}> : () -> ()
    %cst_23 = arith.constant dense<0.000000e+00> : vector<4x8x8xf32>
    %35 = tpu.matmul %30, %32, %cst_23 {dimension_numbers = #tpu.dot_dimension_numbers<[2], [2], [0], [0], [0, 1, 0, 0, 1, 0], [1], [1]>} : vector<8x4x32xbf16>, vector<8x4x32xbf16>, vector<4x8x8xf32> -> vector<4x8x8xf32>
    "tpu.trace_stop"() : () -> ()
    %cst_24 = arith.constant dense<0xFF800000> : vector<4x8xf32>
    %36 = vector.multi_reduction <maximumf>, %35, %cst_24 [2] : vector<4x8x8xf32> to vector<4x8xf32>
    %37 = vector.shape_cast %36 : vector<4x8xf32> to vector<4x8x1xf32>
    %38 = vector.broadcast %37 : vector<4x8x1xf32> to vector<4x8x8xf32>
    %39 = arith.subf %35, %38 : vector<4x8x8xf32>
    %40 = math.exp %39 : vector<4x8x8xf32>
    %cst_25 = arith.constant dense<0.000000e+00> : vector<4x8xf32>
    %41 = vector.multi_reduction <add>, %40, %cst_25 [2] : vector<4x8x8xf32> to vector<4x8xf32>
    %42 = vector.shape_cast %41 : vector<4x8xf32> to vector<4x8x1xf32>
    %43 = tpu.reciprocal %42 {approx = true} : vector<4x8x1xf32> -> vector<4x8x1xf32>
    %44 = vector.broadcast %43 : vector<4x8x1xf32> to vector<4x8x8xf32>
    %45 = arith.mulf %40, %44 : vector<4x8x8xf32>
    %46 = arith.truncf %45 : vector<4x8x8xf32> to vector<4x8x8xbf16>
    "tpu.trace_start"() <{level = 10 : i32, message = "hqk,khd->hqd"}> : () -> ()
    %cst_26 = arith.constant dense<0.000000e+00> : vector<4x8x32xf32>
    %47 = tpu.matmul %46, %34, %cst_26 {dimension_numbers = #tpu.dot_dimension_numbers<[2], [0], [1], [2], [0, 0, 0, 1, 1, 2], [0], [1]>} : vector<4x8x8xbf16>, vector<8x4x32xbf16>, vector<4x8x32xf32> -> vector<4x8x32xf32>
    "tpu.trace_stop"() : () -> ()
    %48 = arith.truncf %47 : vector<4x8x32xf32> to vector<4x8x32xbf16>
    %c0_27 = arith.constant 0 : index
    %c0_28 = arith.constant 0 : index
    %c0_29 = arith.constant 0 : index
    %49 = vector.load %arg10[%c0_27, %c0_28, %c0_29] : memref<4x32x128xbf16, #tpu.memory_space<vmem>>, vector<4x32x128xbf16>
    "tpu.trace_start"() <{level = 10 : i32, message = "hqd,hde->hqe"}> : () -> ()
    %cst_30 = arith.constant dense<0.000000e+00> : vector<4x8x128xf32>
    %50 = tpu.matmul %48, %49, %cst_30 {dimension_numbers = #tpu.dot_dimension_numbers<[2], [1], [1], [2], [0, 0, 0, 1, 1, 2], [0], [0]>} : vector<4x8x32xbf16>, vector<4x32x128xbf16>, vector<4x8x128xf32> -> vector<4x8x128xf32>
    "tpu.trace_stop"() : () -> ()
    %cst_31 = arith.constant dense<0.000000e+00> : vector<8x128xf32>
    %51 = vector.multi_reduction <add>, %50, %cst_31 [0] : vector<4x8x128xf32> to vector<8x128xf32>
    %52 = vector.extract_strided_slice %26 {offsets = [8, 0], sizes = [8, 128], strides = [1, 1]} : vector<16x128xbf16> to vector<8x128xbf16>
    %53 = vector.shape_cast %52 : vector<8x128xbf16> to vector<8x4x32xbf16>
    %54 = vector.extract_strided_slice %27 {offsets = [8, 0], sizes = [8, 128], strides = [1, 1]} : vector<16x128xbf16> to vector<8x128xbf16>
    %55 = vector.shape_cast %54 : vector<8x128xbf16> to vector<8x4x32xbf16>
    %56 = vector.extract_strided_slice %28 {offsets = [8, 0], sizes = [8, 128], strides = [1, 1]} : vector<16x128xbf16> to vector<8x128xbf16>
    %57 = vector.shape_cast %56 : vector<8x128xbf16> to vector<8x4x32xbf16>
    "tpu.trace_start"() <{level = 10 : i32, message = "qhd,khd->hqk"}> : () -> ()
    %cst_32 = arith.constant dense<0.000000e+00> : vector<4x8x8xf32>
    %58 = tpu.matmul %53, %55, %cst_32 {dimension_numbers = #tpu.dot_dimension_numbers<[2], [2], [0], [0], [0, 1, 0, 0, 1, 0], [1], [1]>} : vector<8x4x32xbf16>, vector<8x4x32xbf16>, vector<4x8x8xf32> -> vector<4x8x8xf32>
    "tpu.trace_stop"() : () -> ()
    %cst_33 = arith.constant dense<0xFF800000> : vector<4x8xf32>
    %59 = vector.multi_reduction <maximumf>, %58, %cst_33 [2] : vector<4x8x8xf32> to vector<4x8xf32>
    %60 = vector.shape_cast %59 : vector<4x8xf32> to vector<4x8x1xf32>
    %61 = vector.broadcast %60 : vector<4x8x1xf32> to vector<4x8x8xf32>
    %62 = arith.subf %58, %61 : vector<4x8x8xf32>
    %63 = math.exp %62 : vector<4x8x8xf32>
    %cst_34 = arith.constant dense<0.000000e+00> : vector<4x8xf32>
    %64 = vector.multi_reduction <add>, %63, %cst_34 [2] : vector<4x8x8xf32> to vector<4x8xf32>
    %65 = vector.shape_cast %64 : vector<4x8xf32> to vector<4x8x1xf32>
    %66 = tpu.reciprocal %65 {approx = true} : vector<4x8x1xf32> -> vector<4x8x1xf32>
    %67 = vector.broadcast %66 : vector<4x8x1xf32> to vector<4x8x8xf32>
    %68 = arith.mulf %63, %67 : vector<4x8x8xf32>
    %69 = arith.truncf %68 : vector<4x8x8xf32> to vector<4x8x8xbf16>
    "tpu.trace_start"() <{level = 10 : i32, message = "hqk,khd->hqd"}> : () -> ()
    %cst_35 = arith.constant dense<0.000000e+00> : vector<4x8x32xf32>
    %70 = tpu.matmul %69, %57, %cst_35 {dimension_numbers = #tpu.dot_dimension_numbers<[2], [0], [1], [2], [0, 0, 0, 1, 1, 2], [0], [1]>} : vector<4x8x8xbf16>, vector<8x4x32xbf16>, vector<4x8x32xf32> -> vector<4x8x32xf32>
    "tpu.trace_stop"() : () -> ()
    %71 = arith.truncf %70 : vector<4x8x32xf32> to vector<4x8x32xbf16>
    %c0_36 = arith.constant 0 : index
    %c0_37 = arith.constant 0 : index
    %c0_38 = arith.constant 0 : index
    %72 = vector.load %arg10[%c0_36, %c0_37, %c0_38] : memref<4x32x128xbf16, #tpu.memory_space<vmem>>, vector<4x32x128xbf16>
    "tpu.trace_start"() <{level = 10 : i32, message = "hqd,hde->hqe"}> : () -> ()
    %cst_39 = arith.constant dense<0.000000e+00> : vector<4x8x128xf32>
    %73 = tpu.matmul %71, %72, %cst_39 {dimension_numbers = #tpu.dot_dimension_numbers<[2], [1], [1], [2], [0, 0, 0, 1, 1, 2], [0], [0]>} : vector<4x8x32xbf16>, vector<4x32x128xbf16>, vector<4x8x128xf32> -> vector<4x8x128xf32>
    "tpu.trace_stop"() : () -> ()
    %cst_40 = arith.constant dense<0.000000e+00> : vector<8x128xf32>
    %74 = vector.multi_reduction <add>, %73, %cst_40 [0] : vector<4x8x128xf32> to vector<8x128xf32>
    %75 = tpu.concatenate %51, %74 in 0 : vector<8x128xf32>, vector<8x128xf32> -> vector<16x128xf32>
    %c0_41 = arith.constant 0 : index
    %c0_42 = arith.constant 0 : index
    %76 = vector.load %arg11[%c0_41, %c0_42] : memref<1x128xf32, #tpu.memory_space<vmem>>, vector<1x128xf32>
    %77 = vector.broadcast %76 : vector<1x128xf32> to vector<16x128xf32>
    %78 = arith.addf %75, %77 : vector<16x128xf32>
    %79 = arith.addf %1, %78 : vector<16x128xf32>
    %cst_43 = arith.constant dense<0.000000e+00> : vector<16xf32>
    %80 = vector.multi_reduction <add>, %79, %cst_43 [1] : vector<16x128xf32> to vector<16xf32>
    %81 = vector.shape_cast %80 : vector<16xf32> to vector<16x1xf32>
    %cst_44 = arith.constant 1.280000e+02 : f32
    %82 = vector.broadcast %cst_44 : f32 to vector<16x1xf32>
    %83 = arith.divf %81, %82 : vector<16x1xf32>
    %84 = vector.broadcast %83 : vector<16x1xf32> to vector<16x128xf32>
    %85 = arith.subf %79, %84 : vector<16x128xf32>
    %86 = arith.mulf %85, %85 : vector<16x128xf32>
    %cst_45 = arith.constant dense<0.000000e+00> : vector<16xf32>
    %87 = vector.multi_reduction <add>, %86, %cst_45 [1] : vector<16x128xf32> to vector<16xf32>
    %88 = vector.shape_cast %87 : vector<16xf32> to vector<16x1xf32>
    %cst_46 = arith.constant 1.280000e+02 : f32
    %89 = vector.broadcast %cst_46 : f32 to vector<16x1xf32>
    %90 = arith.divf %88, %89 : vector<16x1xf32>
    %91 = vector.broadcast %83 : vector<16x1xf32> to vector<16x128xf32>
    %92 = arith.subf %79, %91 : vector<16x128xf32>
    %cst_47 = arith.constant 9.99999974E-6 : f32
    %93 = vector.broadcast %cst_47 : f32 to vector<16x1xf32>
    %94 = arith.addf %90, %93 : vector<16x1xf32>
    %95 = math.rsqrt %94 : vector<16x1xf32>
    %96 = vector.broadcast %95 : vector<16x1xf32> to vector<16x128xf32>
    %97 = arith.mulf %92, %96 : vector<16x128xf32>
    %c0_48 = arith.constant 0 : index
    %c0_49 = arith.constant 0 : index
    %98 = vector.load %arg12[%c0_48, %c0_49] : memref<1x128xf32, #tpu.memory_space<vmem>>, vector<1x128xf32>
    %99 = vector.broadcast %98 : vector<1x128xf32> to vector<16x128xf32>
    %100 = arith.mulf %97, %99 : vector<16x128xf32>
    %c0_50 = arith.constant 0 : index
    %c0_51 = arith.constant 0 : index
    %101 = vector.load %arg13[%c0_50, %c0_51] : memref<1x128xf32, #tpu.memory_space<vmem>>, vector<1x128xf32>
    %102 = vector.broadcast %101 : vector<1x128xf32> to vector<16x128xf32>
    %103 = arith.addf %100, %102 : vector<16x128xf32>
    %104 = vector.shape_cast %103 : vector<16x128xf32> to vector<2x8x128xf32>
    %c0_52 = arith.constant 0 : index
    %c0_53 = arith.constant 0 : index
    %c0_54 = arith.constant 0 : index
    %105 = vector.load %arg14[%c0_52, %c0_53, %c0_54] : memref<2x8x128xf32, #tpu.memory_space<vmem>>, vector<2x8x128xf32>
    tpu.vector_store %arg14[%c0_52, %c0_53, %c0_54], %104 {strides = array<i32>} : memref<2x8x128xf32, #tpu.memory_space<vmem>>, vector<2x8x128xf32>,
    return
  }
  func.func @transform_0(%arg0: i32) -> (i32, i32, i32) {
    %c0_i32 = arith.constant 0 : i32
    %c0_i32_0 = arith.constant 0 : i32
    %c0_i32_1 = arith.constant 0 : i32
    return %arg0, %c0_i32, %c0_i32_0 : i32, i32, i32
  }
  func.func @transform_1(%arg0: i32) -> (i32, i32, i32) {
    %c0_i32 = arith.constant 0 : i32
    %c0_i32_0 = arith.constant 0 : i32
    %c0_i32_1 = arith.constant 0 : i32
    return %arg0, %c0_i32, %c0_i32_0 : i32, i32, i32
  }
  func.func @transform_2(%arg0: i32) -> (i32, i32, i32) {
    %c0_i32 = arith.constant 0 : i32
    %c0_i32_0 = arith.constant 0 : i32
    %c0_i32_1 = arith.constant 0 : i32
    return %arg0, %c0_i32, %c0_i32_0 : i32, i32, i32
  }
  func.func @transform_3(%arg0: i32) -> (i32, i32) {
    %c0_i32 = arith.constant 0 : i32
    %c0_i32_0 = arith.constant 0 : i32
    %c0_i32_1 = arith.constant 0 : i32
    return %c0_i32, %c0_i32_0 : i32, i32
  }
  func.func @transform_4(%arg0: i32) -> (i32, i32) {
    %c0_i32 = arith.constant 0 : i32
    %c0_i32_0 = arith.constant 0 : i32
    %c0_i32_1 = arith.constant 0 : i32
    return %c0_i32, %c0_i32_0 : i32, i32
  }
  func.func @transform_5(%arg0: i32) -> (i32, i32) {
    %c0_i32 = arith.constant 0 : i32
    %c0_i32_0 = arith.constant 0 : i32
    %c0_i32_1 = arith.constant 0 : i32
    return %c0_i32, %c0_i32_0 : i32, i32
  }
  func.func @transform_6(%arg0: i32) -> (i32, i32) {
    %c0_i32 = arith.constant 0 : i32
    %c0_i32_0 = arith.constant 0 : i32
    %c0_i32_1 = arith.constant 0 : i32
    return %c0_i32, %c0_i32_0 : i32, i32
  }
  func.func @transform_7(%arg0: i32) -> (i32, i32) {
    %c0_i32 = arith.constant 0 : i32
    %c0_i32_0 = arith.constant 0 : i32
    %c0_i32_1 = arith.constant 0 : i32
    return %c0_i32, %c0_i32_0 : i32, i32
  }
  func.func @transform_8(%arg0: i32) -> (i32, i32) {
    %c0_i32 = arith.constant 0 : i32
    %c0_i32_0 = arith.constant 0 : i32
    %c0_i32_1 = arith.constant 0 : i32
    return %c0_i32, %c0_i32_0 : i32, i32
  }
  func.func @transform_9(%arg0: i32) -> (i32, i32, i32) {
    %c0_i32 = arith.constant 0 : i32
    %c0_i32_0 = arith.constant 0 : i32
    %c0_i32_1 = arith.constant 0 : i32
    %c0_i32_2 = arith.constant 0 : i32
    return %c0_i32, %c0_i32_0, %c0_i32_1 : i32, i32, i32
  }
  func.func @transform_10(%arg0: i32) -> (i32, i32) {
    %c0_i32 = arith.constant 0 : i32
    %c0_i32_0 = arith.constant 0 : i32
    %c0_i32_1 = arith.constant 0 : i32
    return %c0_i32, %c0_i32_0 : i32, i32
  }
  func.func @transform_11(%arg0: i32) -> (i32, i32) {
    %c0_i32 = arith.constant 0 : i32
    %c0_i32_0 = arith.constant 0 : i32
    %c0_i32_1 = arith.constant 0 : i32
    return %c0_i32, %c0_i32_0 : i32, i32
  }
  func.func @transform_12(%arg0: i32) -> (i32, i32) {
    %c0_i32 = arith.constant 0 : i32
    %c0_i32_0 = arith.constant 0 : i32
    %c0_i32_1 = arith.constant 0 : i32
    return %c0_i32, %c0_i32_0 : i32, i32
  }
  func.func @transform_13(%arg0: i32) -> (i32, i32, i32) {
    %c0_i32 = arith.constant 0 : i32
    %c0_i32_0 = arith.constant 0 : i32
    %c0_i32_1 = arith.constant 0 : i32
    return %arg0, %c0_i32, %c0_i32_0 : i32, i32, i32
  }
}

</mosaic_0001>

<bundles_post_ra>
// kernel: tpu_custom_call.1
= control target key start
LH: loop header
LB: loop body
LE: loop exit
PB: predicated region body
PF: predicated region fallthrough
CT: control target
= control target key end

     0   :  { %18 = vsyncpa [#allocation3], 0  ;;  %s3094_s0 = inlined_call_operand.hbm [shape: f32[2,8,128], index: 0, kind: input, shape index: {}]   ;;  %s3095_s1 = inlined_call_operand.hbm [shape: f32[2,8,128], index: 1, kind: input, shape index: {}]   ;;  %s3096_s2 = inlined_call_operand.hbm [shape: f32[2,8,128], index: 2, kind: input, shape index: {}]   ;;  %s3097_s3 = inlined_call_operand.hbm [shape: bf16[128,128], index: 3, kind: input, shape index: {}]   ;;  %s3098_s4 = inlined_call_operand.vmem [shape: f32[1,128], index: 4, kind: input, shape index: {}]   ;;  %s3099_s5 = inlined_call_operand.hbm [shape: bf16[128,128], index: 5, kind: input, shape index: {}]   ;;  %s3100_s6 = inlined_call_operand.vmem [shape: f32[1,128], index: 6, kind: input, shape index: {}]   ;;  %s3101_s7 = inlined_call_operand.hbm [shape: bf16[128,128], index: 7, kind: input, shape index: {}]   ;;  %s3102_s8 = inlined_call_operand.vmem [shape: f32[1,128], index: 8, kind: input, shape index: {}]   ;;  %s3103_s9 = inlined_call_operand.hbm [shape: bf16[4,32,128], index: 9, kind: input, shape index: {}]   ;;  %s3104_s10 = inlined_call_operand.vmem [shape: f32[1,128], index: 10, kind: input, shape index: {}]   ;;  %s3105_s11 = inlined_call_operand.vmem [shape: f32[1,128], index: 11, kind: input, shape index: {}]   ;;  %s3106_s12 = inlined_call_operand.vmem [shape: f32[1,128], index: 12, kind: input, shape index: {}]   ;;  %s3107_s13 = inlined_call_operand.hbm [shape: f32[2,8,128], index: 13, kind: output, shape index: {}]  }
   0x1   :  { %19 = vsyncpa [#allocation6], 0 }
   0x2   :  { %20 = vsyncpa [#allocation9], 0 }
   0x3   :  { %21 = vsyncpa [#allocation12], 0 }
   0x4   :  { %22 = vsyncpa [#allocation4], 0  ;;  %s2690_s25 = smov [#allocation5]   ;;  %s2691_s27 = smov [#allocation8]  }
   0x5   :  { %s40_s26 = sshll.u32 %s2690_s25, 4  ;;  %s64_s28 = sshll.u32 %s2691_s27, 4  ;;  %s41_s26 = int_to_ptr.vmem [resolvable:$true] %s40_s26  ;;  %s65_s28 = int_to_ptr.vmem [resolvable:$true] %s64_s28 }
   0x6   :  { %s2528_s29 = scalar_lea.vmem %s41_s26, 256  ;;  %p2533_p1 = scmp.lt.s32.totalorder %s41_s26, %s41_s26 }
   0x7   :  { %p2529_p0 = scmp.ne.s32.totalorder %s41_s26, %s2528_s29  ;;  %p2534_p2 = scmp.lt.s32.totalorder %s2528_s29, %s2528_s29 }
   0x9   :  { %p2535_p3 = por %p2534_p2, %p2533_p1 }
   0xb   :  { %p2536_p4 = pnand %p2535_p3, %p2529_p0 }
   0xd   :  { %2539 = shalt.err (!%p2536_p4)
}
   0xe   :  { %s2692_s30 = smov 128   ;;  %s2693_s14 = smov 8  }
   0xf   :  { %46 = dma.hbm_to_vmem [thread:$0]  %s3095_s1, 256, %s41_s26, [#allocation6], %s2692_s30, %s2692_s30, %s2693_s14  }
  0x10   :  { %s2548_s17 = scalar_lea.vmem %s65_s28, 1024  ;;  %p2553_p6 = scmp.lt.s32.totalorder %s65_s28, %s65_s28 }
  0x11   :  { %p2549_p5 = scmp.ne.s32.totalorder %s65_s28, %s2548_s17  ;;  %p2554_p7 = scmp.lt.s32.totalorder %s2548_s17, %s2548_s17 }
  0x13   :  { %p2555_p8 = por %p2554_p7, %p2553_p6 }
  0x15   :  { %p2556_p9 = pnand %p2555_p8, %p2549_p5 }
  0x17   :  { %2559 = shalt.err (!%p2556_p9)
}
  0x18   :  { %s2694_s18 = smov 64   ;;  %s2695_s19 = smov 4  }
  0x19   :  { %70 = dma.hbm_to_vmem [thread:$0]  %s3097_s3, 1024, %s65_s28, [#allocation9], %s2694_s18, %s2694_s18, %s2695_s19  }
  0x1a   :  { %s2696_s22 = smov [#allocation11]   ;;  %s2697_s24 = smov [#allocation2]  }
  0x1b   :  { %s92_s23 = sshll.u32 %s2696_s22, 4  ;;  %s28_s1 = sshll.u32 %s2697_s24, 4  ;;  %s93_s23 = int_to_ptr.vmem [resolvable:$true] %s92_s23  ;;  %s29_s1 = int_to_ptr.vmem [resolvable:$true] %s28_s1 }
  0x1c   :  { %s2568_s25 = scalar_lea.vmem %s93_s23, 1024  ;;  %p2573_p11 = scmp.lt.s32.totalorder %s93_s23, %s93_s23 }
  0x1d   :  { %p2569_p10 = scmp.ne.s32.totalorder %s93_s23, %s2568_s25  ;;  %p2574_p12 = scmp.lt.s32.totalorder %s2568_s25, %s2568_s25 }
  0x1f   :  { %p2575_p13 = por %p2574_p12, %p2573_p11 }
  0x21   :  { %p2576_p0 = pnand %p2575_p13, %p2569_p10 }
  0x23   :  { %2579 = shalt.err (!%p2576_p0)
}
  0x24   :  { %98 = dma.hbm_to_vmem [thread:$0]  %s3101_s7, 1024, %s93_s23, [#allocation12], %s2694_s18, %s2694_s18, %s2695_s19  }
  0x25   :  { %s2588_s3 = scalar_lea.vmem %s29_s1, 256  ;;  %p2593_p2 = scmp.lt.s32.totalorder %s29_s1, %s29_s1 }
  0x26   :  { %p2589_p1 = scmp.ne.s32.totalorder %s29_s1, %s2588_s3  ;;  %p2594_p3 = scmp.lt.s32.totalorder %s2588_s3, %s2588_s3 }
  0x28   :  { %p2595_p4 = por %p2594_p3, %p2593_p2 }
  0x2a   :  { %p2596_p5 = pnand %p2595_p4, %p2589_p1 }
  0x2c   :  { %2599 = shalt.err (!%p2596_p5)
}
  0x2d   :  { %34 = dma.hbm_to_vmem [thread:$0]  %s3094_s0, 256, %s29_s1, [#allocation3], %s2692_s30, %s2692_s30, %s2693_s14  }
  0x2e   :  { %s2698_s15 = smov [#allocation7]   ;;  %s2699_s17 = smov [#allocation10]  }
  0x2f   :  { %s52_s16 = sshll.u32 %s2698_s15, 4  ;;  %s78_s20 = sshll.u32 %s2699_s17, 4  ;;  %s53_s16 = int_to_ptr.vmem [resolvable:$true] %s52_s16  ;;  %s79_s20 = int_to_ptr.vmem [resolvable:$true] %s78_s20 }
  0x30   :  { %s2608_s7 = scalar_lea.vmem %s53_s16, 256  ;;  %p2613_p7 = scmp.lt.s32.totalorder %s53_s16, %s53_s16 }
  0x31   :  { %p2609_p6 = scmp.ne.s32.totalorder %s53_s16, %s2608_s7  ;;  %p2614_p8 = scmp.lt.s32.totalorder %s2608_s7, %s2608_s7 }
  0x33   :  { %p2615_p9 = por %p2614_p8, %p2613_p7 }
  0x35   :  { %p2616_p10 = pnand %p2615_p9, %p2609_p6 }
  0x37   :  { %2619 = shalt.err (!%p2616_p10)
}
  0x38   :  { %58 = dma.hbm_to_vmem [thread:$0]  %s3096_s2, 256, %s53_s16, [#allocation6], %s2692_s30, %s2692_s30, %s2693_s14  }
  0x39   :  { %s2628_s0 = scalar_lea.vmem %s79_s20, 1024  ;;  %p2633_p12 = scmp.lt.s32.totalorder %s79_s20, %s79_s20 }
  0x3a   :  { %p2629_p11 = scmp.ne.s32.totalorder %s79_s20, %s2628_s0  ;;  %p2634_p13 = scmp.lt.s32.totalorder %s2628_s0, %s2628_s0 }
  0x3c   :  { %p2635_p0 = por %p2634_p13, %p2633_p12 }
  0x3e   :  { %p2636_p1 = pnand %p2635_p0, %p2629_p11 }
  0x40   :  { %2639 = shalt.err (!%p2636_p1)
}
  0x41   :  { %84 = dma.hbm_to_vmem [thread:$0]  %s3099_s5, 1024, %s79_s20, [#allocation9], %s2694_s18, %s2694_s18, %s2695_s19  }
  0x42   :  { %s2700_s1 = smov [#allocation13]  }
  0x43   :  { %s106_s25 = sshll.u32 %s2700_s1, 4  ;;  %s107_s25 = int_to_ptr.vmem [resolvable:$true] %s106_s25 }
  0x44   :  { %s2648_s26 = scalar_lea.vmem %s107_s25, 1024  ;;  %p2653_p3 = scmp.lt.s32.totalorder %s107_s25, %s107_s25 }
  0x45   :  { %p2649_p2 = scmp.ne.s32.totalorder %s107_s25, %s2648_s26  ;;  %p2654_p4 = scmp.lt.s32.totalorder %s2648_s26, %s2648_s26 }
  0x47   :  { %p2655_p5 = por %p2654_p4, %p2653_p3 }
  0x49   :  { %p2656_p6 = pnand %p2655_p5, %p2649_p2 }
  0x4b   :  { %2659 = shalt.err (!%p2656_p6)
}
  0x4c   :  { %112 = dma.hbm_to_vmem [thread:$0]  %s3103_s9, 1024, %s107_s25, [#allocation12], %s2694_s18, %s2694_s18, %s2695_s19  }
  0x4d   :  { %2680 = dma.done.wait [#allocation3], 256  }
  0x4e   :  { %2681 = vsyncadd [#allocation3], 4294967040 }
  0x4f   :  { %2682 = dma.done.wait [#allocation6], 512  }
  0x50   :  { %2683 = vsyncadd [#allocation6], 4294966784 }
  0x51   :  { %2684 = dma.done.wait [#allocation9], 2048  }
  0x52   :  { %2685 = vsyncadd [#allocation9], 4294965248 }
  0x53   :  { %2686 = dma.done.wait [#allocation12], 2048  }
  0x54   :  { %2687 = vsyncadd [#allocation12], 4294965248  ;;  %v2701_v0 = vmov 0.0   ;;  %vm2702_vm0 = vmmov 0   ;;  %v2444_v1 = vld [vmem:[#allocation10 + $0x38] sm:$0xff]   ;;  %v2445_v2 = vld [vmem:[#allocation10 + $0x30] sm:$0xff]  }
  0x55   :  { %2211 = vmatprep.subr.bf16.mxu1 %v2701_v0  ;;  %2227 = vmatprep.mubr.msk.bf16.mxu1 %vm2702_vm0, %v2701_v0  ;;  %v2446_v3 = vld [vmem:[#allocation10 + $0x28] sm:$0xff]   ;;  %v2452_v4 = vld [vmem:[#allocation8 + $0x38] sm:$0xff]   ;;  %v2447_v5 = vld [vmem:[#allocation10 + $0x20] sm:$0xff]   ;;  %s2703_s28 = smov 32   ;;  %s2704_s29 = smov 96   ;;  %vm579_vm1 = vcmask 261120  }
  0x56   :  { %2191 = vmatprep.subr.bf16.mxu0 %v2701_v0  ;;  %2207 = vmatprep.mubr.msk.bf16.mxu0 %vm2702_vm0, %v2701_v0  ;;  %v2453_v6 = vld [vmem:[#allocation8 + $0x30] sm:$0xff]   ;;  %v2448_v7 = vld [vmem:[#allocation10 + $0x18] sm:$0xff]   ;;  %v2454_v8 = vld [vmem:[#allocation8 + $0x28] sm:$0xff]   ;;  %vm752_vm2 = vcmask 64512   ;;  %vm804_vm3 = vcmask 1043456  }
  0x57   :  { %2212 = vmatpush3.bf16.msra.mxu1 %v2444_v1  ;;  %2192 = vmatpush3.bf16.msra.mxu0 %v2452_v4  ;;  %v2449_v9 = vld [vmem:[#allocation10 + $0x10] sm:$0xff]   ;;  %v2455_v10 = vld [vmem:[#allocation8 + $0x20] sm:$0xff]   ;;  %v2450_v11 = vld [vmem:[#allocation10 + $0x8] sm:$0xff]  }
  0x58   :  { %2213 = vmatprep.subr.bf16.mxu1 %v2701_v0  ;;  %2193 = vmatprep.subr.bf16.mxu0 %v2701_v0  ;;  %v2456_v12 = vld [vmem:[#allocation8 + $0x18] sm:$0xff]   ;;  %v2451_v13 = vld [vmem:[#allocation10] sm:$0xff]   ;;  %v144_v15 = vld [vmem:[#allocation5 + $0x8] sm:$0xff] }
  0x59   :  { %v143_v14 = vld [vmem:[#allocation5] sm:$0xff]  ;;  %v2457_v16 = vld [vmem:[#allocation8 + $0x10] sm:$0xff]   ;;  %v2458_v18 = vld [vmem:[#allocation8 + $0x8] sm:$0xff]  }
  0x5a   :  { %v148_v17 = vpack.c.bf16 %v144_v15, %v143_v14  ;;  %v2459_v19 = vld [vmem:[#allocation8] sm:$0xff]   ;;  %v2840_v20 = vld [vmem:[#allocation2] sm:$0xff]  ;;  %v2842_v21 = vld [vmem:[#allocation2 + $0x8] sm:$0xff] }
  0x5b   :  { %2214 = vmatpush3.bf16.msra.mxu1 %v2445_v2  ;;  %2194 = vmatpush3.bf16.msra.mxu0 %v2453_v6  ;;  %v147_v22 = vpack.c.bf16 %v2842_v21, %v2840_v20  ;;  %v2039_v24 = vld [vmem:[%s3100_s6] ss:$0 sm:$0xff]  ;;  %v2460_v41 = vld [vmem:[#allocation11 + $0x38] sm:$0xff]   ;;  %v2462_v46 = vld [vmem:[#allocation11 + $0x28] sm:$0xff]  }
  0x5c   :  { %2215 = vmatprep.subr.bf16.mxu1 %v2701_v0  ;;  %2195 = vmatprep.subr.bf16.mxu0 %v2701_v0  ;;  %v2030_v31 = vld [vmem:[%s3098_s4] ss:$0 sm:$0xff]  ;;  %v2463_v47 = vld [vmem:[#allocation11 + $0x20] sm:$0xff]   ;;  %v2464_v48 = vld [vmem:[#allocation11 + $0x18] sm:$0xff]  }
  0x5d   :  { %v2461_v44 = vld [vmem:[#allocation11 + $0x30] sm:$0xff]   ;;  %v2466_v52 = vld [vmem:[#allocation11 + $0x8] sm:$0xff]   ;;  %v2467_v53 = vld [vmem:[#allocation11] sm:$0xff]  }
  0x5e   :  { %v2465_v50 = vld [vmem:[#allocation11 + $0x10] sm:$0xff]   ;;  %v146_v55 = vld [vmem:[#allocation7 + $0x8] sm:$0xff] }
  0x5f   :  { %2216 = vmatpush3.bf16.msra.mxu1 %v2446_v3  ;;  %2196 = vmatpush3.bf16.msra.mxu0 %v2454_v8  ;;  %v145_v54 = vld [vmem:[#allocation7] sm:$0xff] }
  0x60   :  { %2217 = vmatprep.subr.bf16.mxu1 %v2701_v0  ;;  %2197 = vmatprep.subr.bf16.mxu0 %v2701_v0  ;;  %v149_v56 = vpack.c.bf16 %v146_v55, %v145_v54 }
  0x63   :  { %2218 = vmatpush3.bf16.msra.mxu1 %v2447_v5  ;;  %2198 = vmatpush3.bf16.msra.mxu0 %v2455_v10 }
  0x64   :  { %2219 = vmatprep.subr.bf16.mxu1 %v2701_v0  ;;  %2199 = vmatprep.subr.bf16.mxu0 %v2701_v0 }
  0x67   :  { %2220 = vmatpush3.bf16.msra.mxu1 %v2448_v7  ;;  %2200 = vmatpush3.bf16.msra.mxu0 %v2456_v12  ;;  %v2048_v12 = vld [vmem:[%s3102_s8] ss:$0 sm:$0xff] }
  0x68   :  { %2221 = vmatprep.subr.bf16.mxu1 %v2701_v0  ;;  %2201 = vmatprep.subr.bf16.mxu0 %v2701_v0 }
  0x6b   :  { %2222 = vmatpush3.bf16.msra.mxu1 %v2449_v9  ;;  %2202 = vmatpush3.bf16.msra.mxu0 %v2457_v16 }
  0x6c   :  { %2223 = vmatprep.subr.bf16.mxu1 %v2701_v0  ;;  %2203 = vmatprep.subr.bf16.mxu0 %v2701_v0 }
  0x6f   :  { %2224 = vmatpush3.bf16.msra.mxu1 %v2450_v11  ;;  %2204 = vmatpush3.bf16.msra.mxu0 %v2458_v18 }
  0x70   :  { %2225 = vmatprep.subr.bf16.mxu1 %v2701_v0  ;;  %2205 = vmatprep.subr.bf16.mxu0 %v2701_v0 }
  0x73   :  { %2226 = vmatpush3.bf16.msra.mxu1 %v2451_v13  ;;  %2206 = vmatpush3.bf16.msra.mxu0 %v2459_v19 }
  0x74   :  { %2251 = vmatprep.subr.bf16.mxu1 %v2701_v0  ;;  %2231 = vmatprep.subr.bf16.mxu0 %v2701_v0 }
  0x76   :  { %2228 = vmatmul.mubr.bf16.vlgmr.msra.gmra.mxu1 %v148_v17  ;;  %2208 = vmatmul.mubr.bf16.vlgmr.msra.gmra.mxu0 %v147_v22 }
  0x77   :  { %2255 = vmatprep.mubr.msk.bf16.mxu1 %vm2702_vm0, %v2701_v0  ;;  %2247 = vmatprep.mubr.msk.bf16.mxu0 %vm2702_vm0, %v2701_v0 }
  0x78   :  { %2232 = vmatpush3.bf16.msra.mxu0 %v2460_v41 }
  0x79   :  { %2233 = vmatprep.subr.bf16.mxu0 %v2701_v0 }
  0x7c   :  { %2234 = vmatpush3.bf16.msra.mxu0 %v2461_v44 }
  0x7d   :  { %2235 = vmatprep.subr.bf16.mxu0 %v2701_v0 }
  0x80   :  { %2236 = vmatpush3.bf16.msra.mxu0 %v2462_v46 }
  0x81   :  { %2237 = vmatprep.subr.bf16.mxu0 %v2701_v0 }
  0x84   :  { %2238 = vmatpush3.bf16.msra.mxu0 %v2463_v47 }
  0x85   :  { %2239 = vmatprep.subr.bf16.mxu0 %v2701_v0 }
  0x88   :  { %2240 = vmatpush3.bf16.msra.mxu0 %v2464_v48 }
  0x89   :  { %2241 = vmatprep.subr.bf16.mxu0 %v2701_v0 }
  0x8c   :  { %2242 = vmatpush3.bf16.msra.mxu0 %v2465_v50 }
  0x8d   :  { %2243 = vmatprep.subr.bf16.mxu0 %v2701_v0 }
  0x90   :  { %2244 = vmatpush3.bf16.msra.mxu0 %v2466_v52 }
  0x91   :  { %2245 = vmatprep.subr.bf16.mxu0 %v2701_v0 }
  0x94   :  { %2246 = vmatpush3.bf16.msra.mxu0 %v2467_v53 }
  0x95   :  { %2283 = vmatprep.subr.bf16.mxu0 %v2701_v0 }
  0x97   :  { %2248 = vmatmul.mubr.bf16.vlgmr.msra.gmra.mxu0 %v149_v56 }
  0x98   :  { %2285 = vmatprep.mubr.msk.bf16.mxu0 %vm2702_vm0, %v2701_v0 }
 0x136   :  { %v369_v23 = vpop.f32.mrf.mxu1  ;;  %v255_v32 = vpop.f32.mrf.mxu0 }
 0x137   :  { %v370_v27 = vadd.f32 %v2039_v24, %v369_v23  ;;  %v256_v33 = vadd.f32 %v2030_v31, %v255_v32 }
 0x138   :  { %v2229_v25 = vpop.f32.mrf.mxu1  ;;  %v2209_v34 = vpop.f32.mrf.mxu0 }
 0x139   :  { %v262_v36 = vmul.f32 0.17677669, %v256_v33 }
 0x13a   :  { %v372_v26 = vpop.f32.mrf.mxu1  ;;  %v258_v35 = vpop.f32.mrf.mxu0 }
 0x13b   :  { %v373_v28 = vadd.f32 %v2039_v24, %v372_v26  ;;  %v259_v37 = vadd.f32 %v2030_v31, %v258_v35 }
 0x13c   :  { %v2230_v29 = vpop.f32.mrf.mxu1  ;;  %v2210_v38 = vpop.f32.mrf.mxu0 }
 0x13d   :  { %v2853_v30 = vpack.c.bf16 %v373_v28, %v370_v27  ;;  %v263_v39 = vmul.f32 0.17677669, %v259_v37 }
 0x13f   :  { %505 = vrot.lane.b32.xlu1 %v2853_v30, %s2703_s28  ;;  %499 = vrot.lane.b32.xlu0 %v2853_v30, %s2704_s29  ;;  %v2864_v40 = vpack.c.bf16 %v263_v39, %v262_v36 }
 0x143   :  { %502 = vrot.lane.b32.xlu0 %v2853_v30, %s2694_s18  ;;  %492 = vrot.lane.b32.xlu1 %v2864_v40, %s2704_s29 }
 0x147   :  { %494 = vrot.lane.b32.xlu1 %v2864_v40, %s2694_s18 }
 0x157   :  { %v481_v8 = vpop.f32.mrf.mxu0 }
 0x158   :  { %v482_v13 = vadd.f32 %v2048_v12, %v481_v8 }
 0x159   :  { %v2249_v9 = vpop.f32.mrf.mxu0 }
 0x15b   :  { %v484_v10 = vpop.f32.mrf.mxu0 }
 0x15c   :  { %v485_v14 = vadd.f32 %v2048_v12, %v484_v10 }
 0x15d   :  { %v2250_v11 = vpop.f32.mrf.mxu0 }
 0x15e   :  { %v2926_v15 = vpack.c.bf16 %v485_v14, %v482_v13 }
 0x160   :  { %v806_v16 = vsel %vm804_vm3, %v2926_v15, 0 }
 0x161   :  { %515 = vxpose.xlu0.c.b16.start.end [1/1] (short) (narrow) %v2853_v30, 32  ;;  %2284 = vmatpush3.bf16.msra.mxu0 %v806_v16 }
 0x162   :  { %2295 = vmatprep.subr.bf16.mxu0 %v2701_v0 }
 0x16e   :  { %496 = vrot.lane.b32.xlu0 %v2864_v40, %s2703_s28 }
 0x1b1   :  { %v2873_v42 = vpop.permute.xlu1 %505  ;;  %v2875_v43 = vpop.permute.xlu0 %499 }
 0x1b2   :  { %563 = vxpose.xlu0.c.b16.start.end [1/1] (short) (narrow) %v2873_v42, 32  ;;  %531 = vxpose.xlu1.c.b16.start.end [1/1] (short) (narrow) %v2875_v43, 32  ;;  %v1230_v41 = vrot.slane %v2875_v43, 4  ;;  %v1232_v44 = vrot.slane %v2873_v42, 4 }
 0x1b5   :  { %v2880_v45 = vpop.permute.xlu0 %502  ;;  %v2898_v57 = vpop.permute.xlu1 %492 }
 0x1b7   :  { %547 = vxpose.xlu1.c.b16.start.end [1/1] (short) (narrow) %v2880_v45, 32 }
 0x1b9   :  { %v2900_v58 = vpop.permute.xlu1 %494 }
 0x1c3   :  { %v523_v49 = vpop.trf.xlu0 }
 0x1c7   :  { %v524_v51 = vpop.trf.xlu0 }
 0x1c8   :  { %2252 = vmatpush3.bf16.msra.mxu1 %v524_v51 }
 0x1c9   :  { %2253 = vmatprep.subr.bf16.mxu1 %v2701_v0 }
 0x1cc   :  { %2254 = vmatpush3.bf16.msra.mxu1 %v523_v49 }
 0x1cd   :  { %2259 = vmatprep.subr.bf16.mxu1 %v2701_v0 }
 0x1cf   :  { %2256 = vmatmul.mubr.msk.bf16.vlgmr.msra.gmra.mxu1 %vm579_vm1, %v2864_v40 }
 0x1d0   :  { %2263 = vmatprep.mubr.msk.bf16.mxu1 %vm2702_vm0, %v2701_v0 }
 0x1e0   :  { %v2903_v61 = vpop.permute.xlu0 %496 }
 0x214   :  { %v539_v59 = vpop.trf.xlu1  ;;  %v571_v1 = vpop.trf.xlu0 }
 0x218   :  { %v540_v60 = vpop.trf.xlu1  ;;  %v572_v2 = vpop.trf.xlu0 }
 0x219   :  { %2260 = vmatpush3.bf16.msra.mxu1 %v540_v60 }
 0x21a   :  { %2261 = vmatprep.subr.bf16.mxu1 %v2701_v0 }
 0x21c   :  { %v555_v62 = vpop.trf.xlu1 }
 0x21d   :  { %2262 = vmatpush3.bf16.msra.mxu1 %v539_v59 }
 0x21e   :  { %2267 = vmatprep.subr.bf16.mxu1 %v2701_v0 }
 0x220   :  { %v556_v63 = vpop.trf.xlu1  ;;  %2264 = vmatmul.mubr.msk.bf16.vlgmr.msra.gmra.mxu1 %vm579_vm1, %v2898_v57 }
 0x221   :  { %2268 = vmatpush3.bf16.msra.mxu1 %v556_v63  ;;  %2271 = vmatprep.mubr.msk.bf16.mxu1 %vm2702_vm0, %v2701_v0 }
 0x222   :  { %2269 = vmatprep.subr.bf16.mxu1 %v2701_v0 }
 0x225   :  { %2270 = vmatpush3.bf16.msra.mxu1 %v555_v62 }
 0x226   :  { %2275 = vmatprep.subr.bf16.mxu1 %v2701_v0 }
 0x228   :  { %2272 = vmatmul.mubr.msk.bf16.vlgmr.msra.gmra.mxu1 %vm579_vm1, %v2900_v58 }
 0x229   :  { %2276 = vmatpush3.bf16.msra.mxu1 %v572_v2  ;;  %2279 = vmatprep.mubr.msk.bf16.mxu1 %vm2702_vm0, %v2701_v0  ;;  %v1229_v2 = vrot.slane %v2853_v30, 4 }
 0x22a   :  { %2277 = vmatprep.subr.bf16.mxu1 %v2701_v0 }
 0x22d   :  { %2278 = vmatpush3.bf16.msra.mxu1 %v571_v1 }
 0x22e   :  { %2289 = vmatprep.subr.bf16.mxu1 %v2701_v0 }
 0x230   :  { %2280 = vmatmul.mubr.msk.bf16.vlgmr.msra.gmra.mxu1 %vm579_vm1, %v2903_v61 }
 0x231   :  { %2291 = vmatprep.mubr.msk.bf16.mxu1 %vm2702_vm0, %v2701_v0 }
 0x28f   :  { %v617_v3 = vpop.f32.mrf.mxu1 }
 0x290   :  { %v753_v4 = vsel %vm752_vm2, %v617_v3, -inf }
 0x291   :  { %754 = vmax.xlane.f32.xlu1 %v753_v4  ;;  %v2257_v5 = vpop.f32.mrf.mxu1 }
 0x292   :  { %v1231_v5 = vrot.slane %v2880_v45, 4 }
 0x293   :  { %v620_v6 = vpop.f32.mrf.mxu1 }
 0x295   :  { %v2258_v7 = vpop.f32.mrf.mxu1 }
 0x2e0   :  { %v660_v17 = vpop.f32.mrf.mxu1 }
 0x2e1   :  { %v756_v18 = vsel %vm752_vm2, %v660_v17, -inf }
 0x2e2   :  { %757 = vmax.xlane.f32.xlu1 %v756_v18  ;;  %v2265_v19 = vpop.f32.mrf.mxu1  ;;  %v2468_v18 = vld [vmem:[#allocation13 + $0x8] sm:$0xff]  }
 0x2e4   :  { %v663_v22 = vpop.f32.mrf.mxu1 }
 0x2e5   :  { %v2469_v22 = vld [vmem:[#allocation13] sm:$0xff]  }
 0x2e6   :  { %v2266_v23 = vpop.f32.mrf.mxu1 }
 0x2e8   :  { %v703_v24 = vpop.f32.mrf.mxu1 }
 0x2e9   :  { %v759_v25 = vsel %vm752_vm2, %v703_v24, -inf }
 0x2ea   :  { %760 = vmax.xlane.f32.xlu1 %v759_v25  ;;  %v2273_v26 = vpop.f32.mrf.mxu1  ;;  %v2470_v25 = vld [vmem:[#allocation13 + $0x18] sm:$0xff]  }
 0x2ec   :  { %v706_v27 = vpop.f32.mrf.mxu1 }
 0x2ed   :  { %v2471_v27 = vld [vmem:[#allocation13 + $0x10] sm:$0xff]  }
 0x2ee   :  { %v2274_v28 = vpop.f32.mrf.mxu1 }
 0x2f0   :  { %v746_v29 = vpop.f32.mrf.mxu1 }
 0x2f1   :  { %v762_v31 = vsel %vm752_vm2, %v746_v29, -inf }
 0x2f2   :  { %763 = vmax.xlane.f32.xlu1 %v762_v31  ;;  %v2281_v32 = vpop.f32.mrf.mxu1 }
 0x2f4   :  { %v749_v33 = vpop.f32.mrf.mxu1 }
 0x2f6   :  { %v2282_v34 = vpop.f32.mrf.mxu1 }
 0x2f7   :  { %v2473_v34 = vld [vmem:[#allocation13 + $0x20] sm:$0xff]  }
 0x303   :  { %509 = vrot.lane.b32.xlu1 %v2926_v15, %s2704_s29 }
 0x31a   :  { %v755_v35 = vpop.xlane.xlu1 %754 }
 0x31b   :  { %v765_v36 = vsub.f32 %v617_v3, %v755_v35 }
 0x31d   :  { %v769_v37 = vmul.f32 1.442695, %v765_v36 }
 0x31f   :  { %2484 = vpow2.f32 %v769_v37 }
 0x32c   :  { %v2485_v38 = vpop.eup %2484 }
 0x32d   :  { %v777_v39 = vsel %vm752_vm2, %v2485_v38, 0.0 }
 0x32e   :  { %778 = vadd.xlane.f32.xlu0 %v777_v39 }
 0x344   :  { %511 = vrot.lane.b32.xlu0 %v2926_v15, %s2694_s18 }
 0x362   :  { %1253 = vxpose.xlu0.c.b16.start.end [1/1] (short) (narrow) %v1230_v41, 32 }
 0x367   :  { %1285 = vxpose.xlu0.c.b16.start.end [1/1] (short) (narrow) %v1232_v44, 32 }
 0x36b   :  { %v758_v46 = vpop.xlane.xlu1 %757 }
 0x36c   :  { %v766_v47 = vsub.f32 %v660_v17, %v758_v46  ;;  %v2475_v46 = vld [vmem:[#allocation13 + $0x30] sm:$0xff]  }
 0x36e   :  { %v771_v48 = vmul.f32 1.442695, %v766_v47 }
 0x370   :  { %2486 = vpow2.f32 %v771_v48 }
 0x373   :  { %v761_v49 = vpop.xlane.xlu1 %760 }
 0x374   :  { %v767_v50 = vsub.f32 %v703_v24, %v761_v49 }
 0x376   :  { %v773_v51 = vmul.f32 1.442695, %v767_v50 }
 0x378   :  { %2488 = vpow2.f32 %v773_v51 }
 0x37b   :  { %v764_v52 = vpop.xlane.xlu1 %763 }
 0x37c   :  { %v768_v53 = vsub.f32 %v746_v29, %v764_v52  ;;  %v2472_v29 = vld [vmem:[#allocation13 + $0x28] sm:$0xff]  }
 0x37d   :  { %v2487_v54 = vpop.eup %2486 }
 0x37e   :  { %v775_v55 = vmul.f32 1.442695, %v768_v53  ;;  %v780_v56 = vsel %vm752_vm2, %v2487_v54, 0.0 }
 0x37f   :  { %781 = vadd.xlane.f32.xlu1 %v780_v56  ;;  %v2942_v43 = vpop.permute.xlu1 %509 }
 0x380   :  { %2490 = vpow2.f32 %v775_v55  ;;  %v852_v42 = vsel %vm804_vm3, %v2942_v43, 0 }
 0x381   :  { %2290 = vmatpush3.bf16.msra.mxu1 %v852_v42 }
 0x382   :  { %2301 = vmatprep.subr.bf16.mxu1 %v2701_v0 }
 0x385   :  { %v2489_v59 = vpop.eup %2488 }
 0x386   :  { %v783_v60 = vsel %vm752_vm2, %v2489_v59, 0.0 }
 0x387   :  { %784 = vadd.xlane.f32.xlu1 %v783_v60 }
 0x38d   :  { %v2491_v62 = vpop.eup %2490 }
 0x38e   :  { %v786_v63 = vsel %vm752_vm2, %v2491_v62, 0.0 }
 0x38f   :  { %787 = vadd.xlane.f32.xlu1 %v786_v63 }
 0x3a0   :  { %513 = vrot.lane.b32.xlu1 %v2926_v15, %s2703_s28 }
 0x3b7   :  { %v779_v1 = vpop.xlane.xlu0 %778 }
 0x3b8   :  { %2492 = vrcp.f32 %v779_v1 }
 0x3bb   :  { %v2952_v4 = vpop.permute.xlu0 %511 }
 0x3bc   :  { %v898_v8 = vsel %vm804_vm3, %v2952_v4, 0 }
 0x3c3   :  { %1237 = vxpose.xlu1.c.b16.start.end [1/1] (short) (narrow) %v1229_v2, 32 }
 0x3c4   :  { %v1261_v49 = vpop.trf.xlu0 }
 0x3c5   :  { %v2493_v3 = vpop.eup %2492 }
 0x3c6   :  { %v793_v6 = vmul.f32 %v2493_v3, %v2485_v38  ;;  %v2474_v38 = vld [vmem:[#allocation13 + $0x38] sm:$0xff]  }
 0x3c8   :  { %1269 = vxpose.xlu1.c.b16.start.end [1/1] (short) (narrow) %v1231_v5, 32  ;;  %v797_v7 = vpack.c.bf16 %v793_v6, %v793_v6  ;;  %v1262_v55 = vpop.trf.xlu0  ;;  %v1345_v5 = vrot.slane %v2898_v57, 4  ;;  %v1389_v6 = vrot.slane %v2900_v58, 4  ;;  %v1572_v57 = vrot.slane %v2942_v43, 4 }
 0x3c9   :  { %v1433_v58 = vrot.slane %v2903_v61, 4 }
 0x3ca   :  { %2286 = vmatmul.mubr.msk.bf16.vlgmr.msra.gmra.mxu0 %vm752_vm2, %v797_v7 }
 0x3cb   :  { %2296 = vmatpush3.bf16.msra.mxu0 %v898_v8  ;;  %2297 = vmatprep.mubr.msk.bf16.mxu0 %vm2702_vm0, %v2701_v0 }
 0x3cc   :  { %2307 = vmatprep.subr.bf16.mxu0 %v2701_v0  ;;  %v1293_v1 = vpop.trf.xlu0 }
 0x3d0   :  { %v1294_v7 = vpop.trf.xlu0 }
 0x408   :  { %v782_v30 = vpop.xlane.xlu1 %781 }
 0x409   :  { %2494 = vrcp.f32 %v782_v30 }
 0x410   :  { %v785_v9 = vpop.xlane.xlu1 %784 }
 0x411   :  { %2496 = vrcp.f32 %v785_v9 }
 0x416   :  { %v2495_v10 = vpop.eup %2494 }
 0x417   :  { %v794_v45 = vmul.f32 %v2495_v10, %v2487_v54 }
 0x418   :  { %v788_v11 = vpop.xlane.xlu1 %787 }
 0x419   :  { %2498 = vrcp.f32 %v788_v11  ;;  %v798_v12 = vpack.c.bf16 %v794_v45, %v794_v45 }
 0x41b   :  { %2292 = vmatmul.mubr.msk.bf16.vlgmr.msra.gmra.mxu1 %vm752_vm2, %v798_v12 }
 0x41c   :  { %v2962_v13 = vpop.permute.xlu1 %513  ;;  %2303 = vmatprep.mubr.msk.bf16.mxu1 %vm2702_vm0, %v2701_v0 }
 0x41d   :  { %v944_v14 = vsel %vm804_vm3, %v2962_v13, 0 }
 0x41e   :  { %v2497_v16 = vpop.eup %2496  ;;  %2302 = vmatpush3.bf16.msra.mxu1 %v944_v14 }
 0x41f   :  { %v795_v17 = vmul.f32 %v2497_v16, %v2489_v59  ;;  %2315 = vmatprep.subr.bf16.mxu1 %v2701_v0 }
 0x421   :  { %v799_v19 = vpack.c.bf16 %v795_v17, %v795_v17 }
 0x423   :  { %2298 = vmatmul.mubr.msk.bf16.vlgmr.msra.gmra.mxu0 %vm752_vm2, %v799_v19 }
 0x424   :  { %2308 = vmatpush3.bf16.msra.mxu0 %v2468_v18  ;;  %2311 = vmatprep.mubr.msk.bf16.mxu0 %vm2702_vm0, %v2701_v0 }
 0x425   :  { %2309 = vmatprep.subr.bf16.mxu0 %v2701_v0  ;;  %v1245_v36 = vpop.trf.xlu1 }
 0x426   :  { %v2499_v23 = vpop.eup %2498 }
 0x427   :  { %v796_v24 = vmul.f32 %v2499_v23, %v2491_v62  ;;  %v1301_v62 = vrot.slane %v2864_v40, 4  ;;  %v1525_v40 = vrot.slane %v2926_v15, 4  ;;  %v1577_v15 = vsel %vm804_vm3, %v1572_v57, 0 }
 0x428   :  { %2310 = vmatpush3.bf16.msra.mxu0 %v2469_v22 }
 0x429   :  { %v800_v26 = vpack.c.bf16 %v796_v24, %v796_v24  ;;  %2323 = vmatprep.subr.bf16.mxu0 %v2701_v0  ;;  %v1246_v47 = vpop.trf.xlu1  ;;  %v1530_v8 = vsel %vm804_vm3, %v1525_v40, 0 }
 0x42b   :  { %2304 = vmatmul.mubr.msk.bf16.vlgmr.msra.gmra.mxu1 %vm752_vm2, %v800_v26 }
 0x42c   :  { %2316 = vmatpush3.bf16.msra.mxu1 %v2470_v25  ;;  %2319 = vmatprep.mubr.msk.bf16.mxu1 %vm2702_vm0, %v2701_v0 }
 0x42d   :  { %2317 = vmatprep.subr.bf16.mxu1 %v2701_v0  ;;  %v1277_v53 = vpop.trf.xlu1 }
 0x430   :  { %2318 = vmatpush3.bf16.msra.mxu1 %v2471_v27 }
 0x431   :  { %2331 = vmatprep.subr.bf16.mxu1 %v2701_v0  ;;  %v1278_v60 = vpop.trf.xlu1 }
 0x48a   :  { %v842_v28 = vpop.f32.mrf.mxu0 }
 0x48b   :  { %v986_v31 = vpack.c.bf16 %v842_v28, %v842_v28 }
 0x48c   :  { %v2287_v32 = vpop.f32.mrf.mxu0 }
 0x48d   :  { %2312 = vmatmul.mubr.msk.bf16.vlgmr.msra.gmra.mxu0 %vm579_vm1, %v986_v31 }
 0x48e   :  { %v845_v33 = vpop.f32.mrf.mxu0  ;;  %2324 = vmatpush3.bf16.msra.mxu0 %v2472_v29  ;;  %2327 = vmatprep.mubr.msk.bf16.mxu0 %vm2702_vm0, %v2701_v0 }
 0x48f   :  { %2325 = vmatprep.subr.bf16.mxu0 %v2701_v0 }
 0x490   :  { %v2288_v35 = vpop.f32.mrf.mxu0 }
 0x492   :  { %2326 = vmatpush3.bf16.msra.mxu0 %v2473_v34 }
 0x493   :  { %2339 = vmatprep.subr.bf16.mxu0 %v2701_v0 }
 0x4db   :  { %v888_v37 = vpop.f32.mrf.mxu1 }
 0x4dc   :  { %v987_v39 = vpack.c.bf16 %v888_v37, %v888_v37 }
 0x4dd   :  { %v2293_v41 = vpop.f32.mrf.mxu1 }
 0x4de   :  { %2320 = vmatmul.mubr.msk.bf16.vlgmr.msra.gmra.mxu1 %vm579_vm1, %v987_v39 }
 0x4df   :  { %v891_v44 = vpop.f32.mrf.mxu1  ;;  %2332 = vmatpush3.bf16.msra.mxu1 %v2474_v38  ;;  %2335 = vmatprep.mubr.msk.bf16.mxu1 %vm2702_vm0, %v2701_v0 }
 0x4e0   :  { %2333 = vmatprep.subr.bf16.mxu1 %v2701_v0 }
 0x4e1   :  { %v2294_v48 = vpop.f32.mrf.mxu1 }
 0x4e3   :  { %v934_v50 = vpop.f32.mrf.mxu0  ;;  %2334 = vmatpush3.bf16.msra.mxu1 %v2475_v46 }
 0x4e4   :  { %v988_v51 = vpack.c.bf16 %v934_v50, %v934_v50  ;;  %2347 = vmatprep.subr.bf16.mxu1 %v2701_v0 }
 0x4e5   :  { %v2299_v52 = vpop.f32.mrf.mxu0 }
 0x4e6   :  { %2328 = vmatmul.mubr.msk.bf16.vlgmr.msra.gmra.mxu0 %vm579_vm1, %v988_v51 }
 0x4e7   :  { %2340 = vmatpush3.bf16.msra.mxu0 %v1246_v47  ;;  %v937_v54 = vpop.f32.mrf.mxu0  ;;  %2343 = vmatprep.mubr.msk.bf16.mxu0 %vm2702_vm0, %v2701_v0 }
 0x4e8   :  { %2341 = vmatprep.subr.bf16.mxu0 %v2701_v0 }
 0x4e9   :  { %v2300_v56 = vpop.f32.mrf.mxu0 }
 0x4eb   :  { %2342 = vmatpush3.bf16.msra.mxu0 %v1245_v36  ;;  %v980_v42 = vpop.f32.mrf.mxu1 }
 0x4ec   :  { %v989_v59 = vpack.c.bf16 %v980_v42, %v980_v42  ;;  %2355 = vmatprep.subr.bf16.mxu0 %v2701_v0 }
 0x4ed   :  { %v2305_v63 = vpop.f32.mrf.mxu1 }
 0x4ee   :  { %2336 = vmatmul.mubr.msk.bf16.vlgmr.msra.gmra.mxu1 %vm579_vm1, %v989_v59  ;;  %2344 = vmatmul.mubr.msk.bf16.vlgmr.msra.gmra.mxu0 %vm579_vm1, %v1301_v62 }
 0x4ef   :  { %2348 = vmatpush3.bf16.msra.mxu1 %v1262_v55  ;;  %2356 = vmatpush3.bf16.msra.mxu0 %v1278_v60  ;;  %v983_v2 = vpop.f32.mrf.mxu1 }
 0x4f0   :  { %2349 = vmatprep.subr.bf16.mxu1 %v2701_v0  ;;  %2357 = vmatprep.subr.bf16.mxu0 %v2701_v0 }
 0x4f1   :  { %v2306_v3 = vpop.f32.mrf.mxu1  ;;  %2351 = vmatprep.mubr.msk.bf16.mxu1 %vm2702_vm0, %v2701_v0  ;;  %2359 = vmatprep.mubr.msk.bf16.mxu0 %vm2702_vm0, %v2701_v0 }
 0x4f3   :  { %2350 = vmatpush3.bf16.msra.mxu1 %v1261_v49  ;;  %2358 = vmatpush3.bf16.msra.mxu0 %v1277_v53 }
 0x4f4   :  { %2363 = vmatprep.subr.bf16.mxu1 %v2701_v0  ;;  %2371 = vmatprep.subr.bf16.mxu0 %v2701_v0 }
 0x4f6   :  { %2352 = vmatmul.mubr.msk.bf16.vlgmr.msra.gmra.mxu1 %vm579_vm1, %v1345_v5  ;;  %2360 = vmatmul.mubr.msk.bf16.vlgmr.msra.gmra.mxu0 %vm579_vm1, %v1389_v6  ;;  %v3033_v6 = vld [vmem:[%s3104_s10] ss:$0 sm:$0xff] }
 0x4f7   :  { %2364 = vmatpush3.bf16.msra.mxu1 %v1294_v7  ;;  %2372 = vmatpush3.bf16.msra.mxu0 %v1530_v8 }
 0x4f8   :  { %2365 = vmatprep.subr.bf16.mxu1 %v2701_v0  ;;  %2367 = vmatprep.mubr.msk.bf16.mxu1 %vm2702_vm0, %v2701_v0 }
 0x4f9   :  { %2373 = vmatprep.mubr.msk.bf16.mxu0 %vm2702_vm0, %v2701_v0  ;;  %2383 = vmatprep.subr.bf16.mxu0 %v2701_v0 }
 0x4fb   :  { %2366 = vmatpush3.bf16.msra.mxu1 %v1293_v1 }
 0x4fc   :  { %2377 = vmatprep.subr.bf16.mxu1 %v2701_v0 }
 0x4fe   :  { %2368 = vmatmul.mubr.msk.bf16.vlgmr.msra.gmra.mxu1 %vm579_vm1, %v1433_v58 }
 0x4ff   :  { %2378 = vmatpush3.bf16.msra.mxu1 %v1577_v15  ;;  %2379 = vmatprep.mubr.msk.bf16.mxu1 %vm2702_vm0, %v2701_v0 }
 0x500   :  { %2389 = vmatprep.subr.bf16.mxu1 %v2701_v0 }
 0x54d   :  { %v1055_v30 = vpop.f32.mrf.mxu0 }
 0x54f   :  { %v2313_v9 = vpop.f32.mrf.mxu0 }
 0x551   :  { %v1058_v10 = vpop.f32.mrf.mxu0 }
 0x553   :  { %v2314_v45 = vpop.f32.mrf.mxu0 }
 0x59e   :  { %v1110_v43 = vpop.f32.mrf.mxu1 }
 0x59f   :  { %v1226_v14 = vadd.f32 %v1110_v43, %v1055_v30 }
 0x5a0   :  { %v2321_v11 = vpop.f32.mrf.mxu1 }
 0x5a2   :  { %v1113_v12 = vpop.f32.mrf.mxu1 }
 0x5a4   :  { %v2322_v61 = vpop.f32.mrf.mxu1 }
 0x5a6   :  { %v1165_v16 = vpop.f32.mrf.mxu0 }
 0x5a7   :  { %v1227_v17 = vadd.f32 %v1226_v14, %v1165_v16  ;;  %v1619_v16 = vrot.slane %v2952_v4, 4  ;;  %v1666_v4 = vrot.slane %v2962_v13, 4 }
 0x5a8   :  { %v2329_v18 = vpop.f32.mrf.mxu0 }
 0x5aa   :  { %v1168_v19 = vpop.f32.mrf.mxu0 }
 0x5ac   :  { %v2330_v22 = vpop.f32.mrf.mxu0 }
 0x5ae   :  { %v1220_v23 = vpop.f32.mrf.mxu1  ;;  %v1339_v24 = vpop.f32.mrf.mxu0 }
 0x5af   :  { %v1228_v25 = vadd.f32 %v1227_v17, %v1220_v23  ;;  %v1477_v26 = vsel %vm752_vm2, %v1339_v24, -inf  ;;  %v1624_v23 = vsel %vm804_vm3, %v1619_v16, 0 }
 0x5b0   :  { %v2337_v27 = vpop.f32.mrf.mxu1  ;;  %1478 = vmax.xlane.f32.xlu1 %v1477_v26  ;;  %v2345_v28 = vpop.f32.mrf.mxu0 }
 0x5b1   :  { %v1963_v57 = vadd.f32 %v3033_v6, %v1228_v25 }
 0x5b2   :  { %v1223_v29 = vpop.f32.mrf.mxu1  ;;  %v1342_v31 = vpop.f32.mrf.mxu0 }
 0x5b3   :  { %v1965_v30 = vadd.f32 %v1963_v57, %v2840_v20  ;;  %v1671_v31 = vsel %vm804_vm3, %v1666_v4, 0 }
 0x5b4   :  { %v2338_v32 = vpop.f32.mrf.mxu1  ;;  %v2346_v33 = vpop.f32.mrf.mxu0 }
 0x5b6   :  { %v1383_v34 = vpop.f32.mrf.mxu1  ;;  %v1427_v35 = vpop.f32.mrf.mxu0 }
 0x5b7   :  { %v1480_v36 = vsel %vm752_vm2, %v1383_v34, -inf  ;;  %v1483_v37 = vsel %vm752_vm2, %v1427_v35, -inf }
 0x5b8   :  { %1481 = vmax.xlane.f32.xlu0 %v1480_v36  ;;  %v2353_v38 = vpop.f32.mrf.mxu1  ;;  %1484 = vmax.xlane.f32.xlu1 %v1483_v37  ;;  %v2361_v39 = vpop.f32.mrf.mxu0  ;;  %v2478_v36 = vld [vmem:[#allocation13 + $0x18] sm:$0xff]   ;;  %v2480_v37 = vld [vmem:[#allocation13 + $0x10] sm:$0xff]  }
 0x5ba   :  { %v1386_v41 = vpop.f32.mrf.mxu1  ;;  %v1430_v44 = vpop.f32.mrf.mxu0 }
 0x5bc   :  { %v2354_v46 = vpop.f32.mrf.mxu1  ;;  %v2362_v47 = vpop.f32.mrf.mxu0 }
 0x5bd   :  { %v3065_v46 = vld [vmem:[%s3105_s11] ss:$0 sm:$0xff]  ;;  %s2705_s11 = smov [#allocation14]  }
 0x5be   :  { %v1471_v48 = vpop.f32.mrf.mxu1 }
 0x5bf   :  { %v1486_v49 = vsel %vm752_vm2, %v1471_v48, -inf }
 0x5c0   :  { %1487 = vmax.xlane.f32.xlu0 %v1486_v49  ;;  %v2369_v50 = vpop.f32.mrf.mxu1 }
 0x5c2   :  { %v1474_v51 = vpop.f32.mrf.mxu1 }
 0x5c4   :  { %v2370_v52 = vpop.f32.mrf.mxu1 }
 0x5c5   :  { %v2479_v52 = vld [vmem:[#allocation13 + $0x28] sm:$0xff]  }
 0x639   :  { %v1479_v53 = vpop.xlane.xlu1 %1478 }
 0x63a   :  { %v1489_v54 = vsub.f32 %v1339_v24, %v1479_v53 }
 0x63c   :  { %v1493_v55 = vmul.f32 1.442695, %v1489_v54 }
 0x63e   :  { %2500 = vpow2.f32 %v1493_v55 }
 0x641   :  { %v1482_v56 = vpop.xlane.xlu0 %1481  ;;  %v1485_v42 = vpop.xlane.xlu1 %1484 }
 0x642   :  { %v1490_v59 = vsub.f32 %v1383_v34, %v1482_v56  ;;  %v1491_v60 = vsub.f32 %v1427_v35, %v1485_v42  ;;  %v2476_v34 = vld [vmem:[#allocation13 + $0x8] sm:$0xff]   ;;  %v2477_v35 = vld [vmem:[#allocation13] sm:$0xff]  }
 0x643   :  { %v2481_v56 = vld [vmem:[#allocation13 + $0x20] sm:$0xff]  }
 0x644   :  { %v1495_v62 = vmul.f32 1.442695, %v1490_v59  ;;  %v1497_v63 = vmul.f32 1.442695, %v1491_v60  ;;  %v2482_v60 = vld [vmem:[#allocation13 + $0x38] sm:$0xff]  }
 0x646   :  { %2502 = vpow2.f32 %v1495_v62 }
 0x647   :  { %2504 = vpow2.f32 %v1497_v63 }
 0x649   :  { %v1488_v1 = vpop.xlane.xlu0 %1487 }
 0x64a   :  { %v1492_v2 = vsub.f32 %v1471_v48, %v1488_v1  ;;  %v3070_v48 = vld [vmem:[%s3106_s12] ss:$0 sm:$0xff]  ;;  %s2015_s12 = sshll.u32 %s2705_s11, 4  ;;  %s2016_s12 = int_to_ptr.vmem [resolvable:$true] %s2015_s12 }
 0x64b   :  { %v2501_v3 = vpop.eup %2500  ;;  %s2660_s20 = scalar_lea.vmem %s2016_s12, 256  ;;  %p2665_p8 = scmp.lt.s32.totalorder %s2016_s12, %s2016_s12 }
 0x64c   :  { %v1499_v40 = vmul.f32 1.442695, %v1492_v2  ;;  %v1501_v5 = vsel %vm752_vm2, %v2501_v3, 0.0  ;;  %p2661_p7 = scmp.ne.s32.totalorder %s2016_s12, %s2660_s20  ;;  %p2666_p9 = scmp.lt.s32.totalorder %s2660_s20, %s2660_s20 }
 0x64d   :  { %1502 = vadd.xlane.f32.xlu1 %v1501_v5  ;;  %v2483_v5 = vld [vmem:[#allocation13 + $0x30] sm:$0xff]  }
 0x64e   :  { %2506 = vpow2.f32 %v1499_v40  ;;  %p2667_p10 = por %p2666_p9, %p2665_p8 }
 0x650   :  { %p2668_p11 = pnand %p2667_p10, %p2661_p7 }
 0x653   :  { %v2503_v7 = vpop.eup %2502 }
 0x654   :  { %v2505_v8 = vpop.eup %2504  ;;  %v1504_v58 = vsel %vm752_vm2, %v2503_v7, 0.0 }
 0x655   :  { %1505 = vadd.xlane.f32.xlu0 %v1504_v58  ;;  %v1507_v15 = vsel %vm752_vm2, %v2505_v8, 0.0 }
 0x656   :  { %1508 = vadd.xlane.f32.xlu1 %v1507_v15 }
 0x65a   :  { %1967 = vadd.xlane.f32.xlu1 %v1965_v30 }
 0x65b   :  { %v2507_v9 = vpop.eup %2506 }
 0x65c   :  { %v1510_v10 = vsel %vm752_vm2, %v2507_v9, 0.0 }
 0x65d   :  { %1511 = vadd.xlane.f32.xlu0 %v1510_v10 }
 0x6d6   :  { %v1503_v45 = vpop.xlane.xlu1 %1502 }
 0x6d7   :  { %2508 = vrcp.f32 %v1503_v45 }
 0x6de   :  { %v1506_v43 = vpop.xlane.xlu0 %1505 }
 0x6df   :  { %2510 = vrcp.f32 %v1506_v43  ;;  %v1509_v11 = vpop.xlane.xlu1 %1508 }
 0x6e0   :  { %2512 = vrcp.f32 %v1509_v11 }
 0x6e3   :  { %v1968_v12 = vpop.xlane.xlu1 %1967 }
 0x6e4   :  { %v2509_v61 = vpop.eup %2508  ;;  %v1972_v14 = vmul.f32 0.0078125, %v1968_v12 }
 0x6e5   :  { %v1517_v17 = vmul.f32 %v2509_v61, %v2501_v3 }
 0x6e6   :  { %v1974_v18 = vsub.f32 %v1965_v30, %v1972_v14  ;;  %v1512_v19 = vpop.xlane.xlu0 %1511 }
 0x6e7   :  { %2514 = vrcp.f32 %v1512_v19  ;;  %v1521_v20 = vpack.c.bf16 %v1517_v17, %v1517_v17 }
 0x6e8   :  { %v1976_v22 = vmul.f32 %v1974_v18, %v1974_v18 }
 0x6e9   :  { %2374 = vmatmul.mubr.msk.bf16.vlgmr.msra.gmra.mxu0 %vm752_vm2, %v1521_v20 }
 0x6ea   :  { %2384 = vmatpush3.bf16.msra.mxu0 %v1624_v23  ;;  %1978 = vadd.xlane.f32.xlu1 %v1976_v22 }
 0x6eb   :  { %2385 = vmatprep.mubr.msk.bf16.mxu0 %vm2702_vm0, %v2701_v0  ;;  %2395 = vmatprep.subr.bf16.mxu0 %v2701_v0 }
 0x6ec   :  { %v2511_v24 = vpop.eup %2510 }
 0x6ed   :  { %v2513_v25 = vpop.eup %2512  ;;  %v1518_v26 = vmul.f32 %v2511_v24, %v2503_v7 }
 0x6ee   :  { %v1519_v27 = vmul.f32 %v2513_v25, %v2505_v8 }
 0x6ef   :  { %v1522_v28 = vpack.c.bf16 %v1518_v26, %v1518_v26 }
 0x6f0   :  { %v1523_v29 = vpack.c.bf16 %v1519_v27, %v1519_v27 }
 0x6f1   :  { %2380 = vmatmul.mubr.msk.bf16.vlgmr.msra.gmra.mxu1 %vm752_vm2, %v1522_v28 }
 0x6f2   :  { %2386 = vmatmul.mubr.msk.bf16.vlgmr.msra.gmra.mxu0 %vm752_vm2, %v1523_v29  ;;  %2390 = vmatpush3.bf16.msra.mxu1 %v1671_v31 }
 0x6f3   :  { %2391 = vmatprep.mubr.msk.bf16.mxu1 %vm2702_vm0, %v2701_v0  ;;  %2399 = vmatprep.mubr.msk.bf16.mxu0 %vm2702_vm0, %v2701_v0 }
 0x6f4   :  { %v2515_v32 = vpop.eup %2514  ;;  %2403 = vmatprep.subr.bf16.mxu1 %v2701_v0  ;;  %2396 = vmatpush3.bf16.msra.mxu0 %v2476_v34 }
 0x6f5   :  { %v1520_v13 = vmul.f32 %v2515_v32, %v2507_v9  ;;  %2397 = vmatprep.subr.bf16.mxu0 %v2701_v0 }
 0x6f7   :  { %v1524_v33 = vpack.c.bf16 %v1520_v13, %v1520_v13 }
 0x6f8   :  { %2398 = vmatpush3.bf16.msra.mxu0 %v2477_v35 }
 0x6f9   :  { %2392 = vmatmul.mubr.msk.bf16.vlgmr.msra.gmra.mxu1 %vm752_vm2, %v1524_v33  ;;  %2411 = vmatprep.subr.bf16.mxu0 %v2701_v0 }
 0x6fa   :  { %2407 = vmatprep.mubr.msk.bf16.mxu1 %vm2702_vm0, %v2701_v0  ;;  %2404 = vmatpush3.bf16.msra.mxu1 %v2478_v36 }
 0x6fb   :  { %2405 = vmatprep.subr.bf16.mxu1 %v2701_v0 }
 0x6fe   :  { %2406 = vmatpush3.bf16.msra.mxu1 %v2480_v37 }
 0x6ff   :  { %2419 = vmatprep.subr.bf16.mxu1 %v2701_v0 }
 0x773   :  { %v1979_v38 = vpop.xlane.xlu1 %1978 }
 0x774   :  { %v1982_v39 = vmul.f32 0.0078125, %v1979_v38 }
 0x776   :  { %v1984_v41 = vadd.f32 1e-05, %v1982_v39 }
 0x778   :  { %2516 = vrsqrt.f32 %v1984_v41 }
 0x785   :  { %v2517_v44 = vpop.eup %2516 }
 0x786   :  { %v1988_v47 = vmul.f32 %v2517_v44, %v1974_v18 }
 0x788   :  { %v1997_v49 = vmul.f32 %v3065_v46, %v1988_v47 }
 0x78a   :  { %v2006_v50 = vadd.f32 %v3070_v48, %v1997_v49 }
 0x78c   :  { %2008 = vst [vmem:[#allocation14] sm:$0xff] %v2006_v50 }
 0x7a9   :  { %v1566_v51 = vpop.f32.mrf.mxu0 }
 0x7aa   :  { %v1713_v53 = vpack.c.bf16 %v1566_v51, %v1566_v51 }
 0x7ab   :  { %v2375_v54 = vpop.f32.mrf.mxu0 }
 0x7ac   :  { %2400 = vmatmul.mubr.msk.bf16.vlgmr.msra.gmra.mxu0 %vm579_vm1, %v1713_v53 }
 0x7ad   :  { %v1569_v55 = vpop.f32.mrf.mxu0  ;;  %2412 = vmatpush3.bf16.msra.mxu0 %v2479_v52  ;;  %2415 = vmatprep.mubr.msk.bf16.mxu0 %vm2702_vm0, %v2701_v0 }
 0x7ae   :  { %2413 = vmatprep.subr.bf16.mxu0 %v2701_v0 }
 0x7af   :  { %v2376_v42 = vpop.f32.mrf.mxu0 }
 0x7b1   :  { %v1613_v59 = vpop.f32.mrf.mxu1  ;;  %2414 = vmatpush3.bf16.msra.mxu0 %v2481_v56 }
 0x7b2   :  { %v1714_v62 = vpack.c.bf16 %v1613_v59, %v1613_v59  ;;  %v1660_v63 = vpop.f32.mrf.mxu0 }
 0x7b3   :  { %v1715_v1 = vpack.c.bf16 %v1660_v63, %v1660_v63  ;;  %v2381_v2 = vpop.f32.mrf.mxu1 }
 0x7b4   :  { %v2387_v3 = vpop.f32.mrf.mxu0  ;;  %2408 = vmatmul.mubr.msk.bf16.vlgmr.msra.gmra.mxu1 %vm579_vm1, %v1714_v62 }
 0x7b5   :  { %2416 = vmatmul.mubr.msk.bf16.vlgmr.msra.gmra.mxu0 %vm579_vm1, %v1715_v1  ;;  %v1616_v40 = vpop.f32.mrf.mxu1  ;;  %2420 = vmatpush3.bf16.msra.mxu1 %v2482_v60 }
 0x7b6   :  { %v1663_v7 = vpop.f32.mrf.mxu0  ;;  %2421 = vmatprep.subr.bf16.mxu1 %v2701_v0  ;;  %2423 = vmatprep.mubr.msk.bf16.mxu1 %vm2702_vm0, %v2701_v0 }
 0x7b7   :  { %v2382_v8 = vpop.f32.mrf.mxu1 }
 0x7b8   :  { %v2388_v57 = vpop.f32.mrf.mxu0 }
 0x7b9   :  { %v1707_v58 = vpop.f32.mrf.mxu1  ;;  %2422 = vmatpush3.bf16.msra.mxu1 %v2483_v5 }
 0x7ba   :  { %v1716_v15 = vpack.c.bf16 %v1707_v58, %v1707_v58 }
 0x7bb   :  { %v2393_v30 = vpop.f32.mrf.mxu1 }
 0x7bc   :  { %2424 = vmatmul.mubr.msk.bf16.vlgmr.msra.gmra.mxu1 %vm579_vm1, %v1716_v15 }
 0x7bd   :  { %v1710_v9 = vpop.f32.mrf.mxu1 }
 0x7bf   :  { %v2394_v10 = vpop.f32.mrf.mxu1 }
 0x86c   :  { %v1782_v45 = vpop.f32.mrf.mxu0 }
 0x86e   :  { %v2401_v43 = vpop.f32.mrf.mxu0 }
 0x870   :  { %v1785_v11 = vpop.f32.mrf.mxu0 }
 0x872   :  { %v2402_v12 = vpop.f32.mrf.mxu0 }
 0x874   :  { %v1837_v61 = vpop.f32.mrf.mxu1 }
 0x875   :  { %v1892_v14 = vpop.f32.mrf.mxu0  ;;  %v1953_v17 = vadd.f32 %v1837_v61, %v1782_v45 }
 0x876   :  { %v2409_v16 = vpop.f32.mrf.mxu1 }
 0x877   :  { %v2417_v18 = vpop.f32.mrf.mxu0  ;;  %v1954_v22 = vadd.f32 %v1953_v17, %v1892_v14 }
 0x878   :  { %v1840_v0 = vpop.f32.mrf.mxu1 }
 0x879   :  { %v1895_v19 = vpop.f32.mrf.mxu0 }
 0x87a   :  { %v2410_v20 = vpop.f32.mrf.mxu1 }
 0x87b   :  { %v2418_v23 = vpop.f32.mrf.mxu0 }
 0x87c   :  { %v1947_v24 = vpop.f32.mrf.mxu1 }
 0x87d   :  { %v1955_v25 = vadd.f32 %v1954_v22, %v1947_v24 }
 0x87e   :  { %v2425_v4 = vpop.f32.mrf.mxu1 }
 0x87f   :  { %v1964_v26 = vadd.f32 %v3033_v6, %v1955_v25 }
 0x880   :  { %v1950_v27 = vpop.f32.mrf.mxu1 }
 0x881   :  { %v1966_v28 = vadd.f32 %v1964_v26, %v2842_v21 }
 0x882   :  { %v2426_v29 = vpop.f32.mrf.mxu1 }
 0x883   :  { %1969 = vadd.xlane.f32.xlu0 %v1966_v28 }
 0x90c   :  { %v1970_v31 = vpop.xlane.xlu0 %1969 }
 0x90d   :  { %v1973_v32 = vmul.f32 0.0078125, %v1970_v31 }
 0x90f   :  { %v1975_v13 = vsub.f32 %v1966_v28, %v1973_v32 }
 0x911   :  { %v1977_v33 = vmul.f32 %v1975_v13, %v1975_v13 }
 0x913   :  { %1980 = vadd.xlane.f32.xlu0 %v1977_v33 }
 0x99c   :  { %v1981_v34 = vpop.xlane.xlu0 %1980 }
 0x99d   :  { %v1983_v35 = vmul.f32 0.0078125, %v1981_v34 }
 0x99f   :  { %v1985_v36 = vadd.f32 1e-05, %v1983_v35 }
 0x9a1   :  { %2518 = vrsqrt.f32 %v1985_v36 }
 0x9ae   :  { %v2519_v37 = vpop.eup %2518 }
 0x9af   :  { %v1989_v38 = vmul.f32 %v2519_v37, %v1975_v13 }
 0x9b1   :  { %v1998_v6 = vmul.f32 %v3065_v46, %v1989_v38 }
 0x9b3   :  { %v2007_v39 = vadd.f32 %v3070_v48, %v1998_v6 }
 0x9b5   :  { %2009 = vst [vmem:[#allocation14 + $0x8] sm:$0xff] %v2007_v39 }
 0x9b6   :  { %2671 = shalt.err (!%p2668_p11)
}
 0x9b7   :  { %2021 = dma.vmem_to_hbm [thread:$0]  %s2016_s12, 256, %s3107_s13, [#allocation4], %s2692_s30, %s2692_s30, %s2693_s14  }
 0x9b8   :  { %2688 = dma.done.wait [#allocation4], 256  }
 0x9b9   :  { %2689 = vsyncadd [#allocation4], 4294967040 }
 0x9ba   :  { %2025 = vsyncpa [#allocation3], 1 }
 0x9bb   :  { %2026 = vsyncpa [#allocation6], 1 }
 0x9bc   :  { %2027 = vsyncpa [#allocation9], 1 }
 0x9bd   :  { %2028 = vsyncpa [#allocation12], 1 }
 0x9be   :  { %2029 = vsyncpa [#allocation4], 1 }

</bundles_post_ra>
